<compile_context>
chip_gen: v7x
topology: tpu7x:2x2x1
jax: 0.10.0
libtpu: 0.0.40
codegen_flags: <defaults>
</compile_context>

<pallas_src>
import jax
import jax.numpy as jnp
from jax.experimental import pallas as pl
from jax.experimental.pallas import tpu as pltpu


# -----------------------------------------------------------------------------
# Fused Pallas kernel: NB batch images per grid step, everything lane-dense.
# -----------------------------------------------------------------------------
def _unet_upconv_fused_kernel(
        x_ref,          # (1, M, W_in*Cin)  row-upsampled input, lane-dense, mxu dtype
        enc_ref,        # (1, M, W*Cout)    encoder features, lane-dense, mxu dtype
        mtop_ref,       # (M, 1) f32  0.0 at each image's first row, else 1.0
        mbot_ref,       # (M, 1) f32  0.0 at each image's last row,  else 1.0
        band_up_ref,    # (3, W_in*Cin, W*Cout)  up-conv bands (upsample folded in)
        band_c1u_ref,   # (3, W*Cout,   W*Cout)  convblock conv1, up_feat channel group
        band_c1e_ref,   # (3, W*Cout,   W*Cout)  convblock conv1, encoder channel group
        band_c2_ref,    # (3, W*Cout,   W*Cout)  convblock conv2
        post_up_ref,    # (3, W*Cout)  rows: conv bias, BN scale, BN shift (f32)
        post_c1_ref,    # (3, W*Cout)
        post_c2_ref,    # (3, W*Cout)
        o_ref):         # (1, M, W*Cout) f32
    f32 = jnp.float32
    m = o_ref.shape[1]                   # NB*H rows in this slab
    mxu = x_ref.dtype                    # bf16 (v6e/v7x fast path) or f32

    mtop = mtop_ref[...]                 # (M, 1)
    mbot = mbot_ref[...]

    def mm(a, b):
        # MXU matmul with f32 accumulation regardless of operand dtype.
        return jnp.dot(a, b, preferred_element_type=f32)

    def conv3x3(pairs):
        # 3x3 'same' conv in lane-dense (M, W*C) layout over a stack of NB
        # images.  For each kernel row r: p_r = sum_g x_g @ band_g[r] (fuses
        # the channel-group concat); the row halo is a +/-1-row roll on the
        # XLU, with the row that wrapped across an image boundary zeroed by
        # the per-image mask on the VPU.  No 0/1 shift matmuls, no padding.
        def tap(r):
            acc = None
            for act, band_ref in pairs:
                t = mm(act, band_ref[r])
                acc = t if acc is None else acc + t
            return acc
        acc = tap(1)                                                  # same row
        acc = acc + mtop * pltpu.roll(tap(0), shift=1, axis=0)        # row above
        acc = acc + mbot * pltpu.roll(tap(2), shift=m - 1, axis=0)    # row below
        return acc

    def bias_relu_bn(acc, post_ref):
        post = post_ref[...]                                # (3, W*Cout) f32
        y = jnp.maximum(acc + post[0:1, :], 0.0)            # conv bias + ReLU
        return y * post[1:2, :] + post[2:3, :]              # BN affine (inference)

    x = x_ref[0]                                            # (M, W_in*Cin)
    enc = enc_ref[0]                                        # (M, W*Cout)

    # ---- upconv: Upsample(x2) folded into band_up / wrapper, then conv+ReLU+BN.
    up_feat = bias_relu_bn(conv3x3([(x, band_up_ref)]), post_up_ref)

    # ---- convblock conv1 over torch.cat([up_feat, enc], channel); the concat
    #      is fused by splitting the contraction over the two channel groups.
    y = bias_relu_bn(
        conv3x3([(up_feat.astype(mxu), band_c1u_ref), (enc, band_c1e_ref)]),
        post_c1_ref)

    # ---- convblock conv2 + ReLU + BN.
    y = bias_relu_bn(conv3x3([(y.astype(mxu), band_c2_ref)]), post_c2_ref)

    o_ref[0] = y.astype(o_ref.dtype)                        # full-lane store


# -----------------------------------------------------------------------------
# Wrapper: layout plumbing, operator/band construction, pallas_call.
# -----------------------------------------------------------------------------
def unet_upconv_block(params, inputs_nchw, encoder_nchw, *,
                      mxu_dtype=jnp.bfloat16, target_rows=256,
                      out_layout="nchw"):
    """Fused UNet up-conv block.

    mxu_dtype: dtype of the MXU operands (activations / band matrices).  bf16
        is the v6e/v7x fast path (accumulation is always f32); use jnp.float32
        for exact parity with the f32 reference.
    target_rows: rows (M = NB*H) per grid step; >=128 fills the v5e MXU,
        >=256 the v6e/v7x MXU.  On v7x also prefer >=2 grid steps (2 TCs).
    out_layout: "nchw" (PyTorch convention) or "nhwc" to skip the post-kernel
        HBM transpose when the consumer is layout-agnostic.
    """
    f32 = jnp.float32
    N, Cin, H_in, W_in = inputs_nchw.shape
    Cout = params["up"]["w"].shape[-1]
    H, W = 2 * H_in, 2 * W_in
    assert encoder_nchw.shape == (N, Cout, H, W), encoder_nchw.shape

    # ---- batch folding: NB images per grid step -> M = NB*H matmul rows.
    NB = max(1, min(N, max(1, target_rows // H)))
    S = -(-N // NB)                          # grid steps
    N_pad = S * NB
    M = NB * H
    K_in = W_in * Cin
    K_out = W * Cout

    # NCHW -> NHWC, nearest 2x ROW upsample in the wrapper (the COLUMN repeat
    # is folded into the band matrices below), channels folded into lanes.
    x = jnp.transpose(inputs_nchw, (0, 2, 3, 1)).astype(f32)        # (N,H_in,W_in,Cin)
    x = jnp.repeat(x, 2, axis=1).reshape(N, H, K_in)                 # (N,H,W_in*Cin)
    enc = jnp.transpose(encoder_nchw, (0, 2, 3, 1)).astype(f32).reshape(N, H, K_out)
    if N_pad != N:
        x = jnp.pad(x, ((0, N_pad - N), (0, 0), (0, 0)))
        enc = jnp.pad(enc, ((0, N_pad - N), (0, 0), (0, 0)))
    x = x.reshape(S, M, K_in).astype(mxu_dtype)
    enc = enc.reshape(S, M, K_out).astype(mxu_dtype)

    # Per-image first/last-row masks: zero the row-halo term that wrapped
    # across an image boundary after the in-kernel roll.
    row = jnp.arange(M)
    mask_top = (row % H != 0).astype(f32)[:, None]                   # (M, 1)
    mask_bot = (row % H != H - 1).astype(f32)[:, None]

    hi = jax.lax.Precision.HIGHEST

    def make_bands(w):
        # w: (3, 3, ci, co) HWIO -> (3, W*ci, W*co) banded matrices with the
        # 'same' column padding baked in (out-of-range taps contribute zero).
        KH, KW, ci, co = w.shape
        dx = jnp.arange(KW)[:, None, None]
        p = jnp.arange(W)[None, :, None]
        j = jnp.arange(W)[None, None, :]
        sel = (p == j + dx - (KW - 1) // 2).astype(f32)              # (KW, W, W)
        band = jnp.einsum("xpj,yxio->ypijo", sel, w.astype(f32), precision=hi)
        return band.reshape(KH, W * ci, W * co)

    def make_post(pr):
        # Per-output-lane conv-bias / BN-scale / BN-shift rows (kept f32).
        return jnp.stack([jnp.tile(pr["b"].astype(f32), W),
                          jnp.tile(pr["scale"].astype(f32), W),
                          jnp.tile(pr["shift"].astype(f32), W)], axis=0)

    # Fold the upsample column repeat into the up-conv bands (exact 0/1 algebra):
    # K shrinks from W*Cin to W_in*Cin and the in-kernel crep/rrep matmuls vanish.
    crep = jnp.kron(jnp.repeat(jnp.eye(W_in, dtype=f32), 2, axis=1),
                    jnp.eye(Cin, dtype=f32))                         # (W_in*Cin, W*Cin)
    band_up = jnp.einsum("km,ymo->yko", crep, make_bands(params["up"]["w"]),
                         precision=hi)                               # (3, W_in*Cin, W*Cout)

    w_c1 = params["c1"]["w"]
    band_c1u = make_bands(w_c1[:, :, :Cout, :])        # up_feat channel group
    band_c1e = make_bands(w_c1[:, :, Cout:, :])        # encoder channel group
    band_c2 = make_bands(params["c2"]["w"])
    band_up, band_c1u, band_c1e, band_c2 = (
        b.astype(mxu_dtype) for b in (band_up, band_c1u, band_c1e, band_c2))

    post_up, post_c1, post_c2 = (make_post(params[k]) for k in ("up", "c1", "c2"))

    def const_spec(arr):
        # Grid-invariant operand (index_map returns the same block every step,
        # so Pallas only DMAs it once).
        # TODO(synk): at realistic widths mark these pipeline_mode=pl.Buffered(1)
        # (or DMA once into scratch) to avoid double-buffered VMEM on v7x.
        nd = arr.ndim
        return pl.BlockSpec(arr.shape, lambda s, _nd=nd: (0,) * _nd)

    out = pl.pallas_call(
        _unet_upconv_fused_kernel,
        out_shape=jax.ShapeDtypeStruct((S, M, K_out), f32),
        grid_spec=pltpu.PrefetchScalarGridSpec(
            num_scalar_prefetch=0,
            grid=(S,),
            in_specs=[
                pl.BlockSpec((1, M, K_in), lambda s: (s, 0, 0)),
                pl.BlockSpec((1, M, K_out), lambda s: (s, 0, 0)),
                const_spec(mask_top), const_spec(mask_bot),
                const_spec(band_up), const_spec(band_c1u),
                const_spec(band_c1e), const_spec(band_c2),
                const_spec(post_up), const_spec(post_c1), const_spec(post_c2),
            ],
            out_specs=pl.BlockSpec((1, M, K_out), lambda s: (s, 0, 0)),
        ),
        compiler_params=pltpu.CompilerParams(
            dimension_semantics=("parallel",)),
    )(x, enc, mask_top, mask_bot,
      band_up, band_c1u, band_c1e, band_c2, post_up, post_c1, post_c2)

    out = out.reshape(N_pad, H, W, Cout)[:N]
    if out_layout == "nhwc":
        return out                                   # lane-dense friendly, no transpose
    return jnp.transpose(out, (0, 3, 1, 2))          # NCHW module output convention


# -----------------------------------------------------------------------------
# Parameter construction (deterministic, synthetic).
# -----------------------------------------------------------------------------
def _make_conv_bn_params(key, cin, cout, eps=1e-5):
    kw, kb, kg, kbeta, km, kv = jax.random.split(key, 6)
    bound = 1.0 / jnp.sqrt(jnp.float32(cin * 9))
    w = jax.random.uniform(kw, (3, 3, cin, cout), jnp.float32, -bound, bound)
    b = jax.random.uniform(kb, (cout,), jnp.float32, -bound, bound)
    gamma = 1.0 + 0.1 * jax.random.normal(kg, (cout,), jnp.float32)
    beta = 0.1 * jax.random.normal(kbeta, (cout,), jnp.float32)
    run_mean = 0.05 * jax.random.normal(km, (cout,), jnp.float32)
    run_var = 1.0 + 0.1 * jax.random.uniform(kv, (cout,), jnp.float32)
    scale = gamma / jnp.sqrt(run_var + eps)
    shift = beta - run_mean * scale
    return {"w": w, "b": b, "scale": scale, "shift": shift}


def init_unet_upconv_block(key, cin, cout):
    k1, k2, k3 = jax.random.split(key, 3)
    return {
        "up": _make_conv_bn_params(k1, cin, cout),          # upconv conv
        "c1": _make_conv_bn_params(k2, 2 * cout, cout),     # convblock conv 1
        "c2": _make_conv_bn_params(k3, cout, cout),         # convblock conv 2
    }


# -----------------------------------------------------------------------------
# Pure-JAX reference (lax conv) for correctness checking.
# -----------------------------------------------------------------------------
def _ref_conv_relu_bn(x, p):
    y = jax.lax.conv_general_dilated(
        x, p["w"], window_strides=(1, 1), padding="SAME",
        dimension_numbers=("NHWC", "HWIO", "NHWC"),
        precision=jax.lax.Precision.HIGHEST)
    y = jnp.maximum(y + p["b"][None, None, None, :], 0.0)
    return y * p["scale"][None, None, None, :] + p["shift"][None, None, None, :]


def unet_upconv_block_ref(params, inputs_nchw, encoder_nchw):
    x = jnp.transpose(inputs_nchw, (0, 2, 3, 1)).astype(jnp.float32)
    enc = jnp.transpose(encoder_nchw, (0, 2, 3, 1)).astype(jnp.float32)
    x_up = jnp.repeat(jnp.repeat(x, 2, axis=1), 2, axis=2)
    u = _ref_conv_relu_bn(x_up, params["up"])
    cat = jnp.concatenate([u, enc], axis=-1)
    y = _ref_conv_relu_bn(cat, params["c1"])
    y = _ref_conv_relu_bn(y, params["c2"])
    return jnp.transpose(y, (0, 3, 1, 2))


# -----------------------------------------------------------------------------
if __name__ == "__main__":
    key = jax.random.PRNGKey(0)
    k_param, k_in, k_enc = jax.random.split(key, 3)

    N, CIN, COUT = 2, 4, 8
    H_IN, W_IN = 8, 8                 # upsampled to 16x16; W*Cout = 128 lanes

    params = init_unet_upconv_block(k_param, CIN, COUT)
    inputs = jax.random.normal(k_in, (N, CIN, H_IN, W_IN), jnp.float32)          # NCHW
    encoder_features = jax.random.normal(
        k_enc, (N, COUT, 2 * H_IN, 2 * W_IN), jnp.float32)                       # NCHW

    ref = jax.block_until_ready(
        unet_upconv_block_ref(params, inputs, encoder_features))

    # f32 MXU-operand path: tight check against the f32 reference.
    fwd_f32 = jax.jit(
        lambda p, a, b: unet_upconv_block(p, a, b, mxu_dtype=jnp.float32))
    out = jax.block_until_ready(fwd_f32(params, inputs, encoder_features))
    assert out.shape == (N, COUT, 2 * H_IN, 2 * W_IN), out.shape
    assert bool(jnp.all(jnp.isfinite(out)))
    err = float(jnp.max(jnp.abs(out - ref)))
    assert err < 1e-3, f"f32 path max abs error {err}"

    # bf16 MXU-operand fast path (v6e/v7x); accumulation stays f32, so only
    # operand-rounding error is expected.
    fwd_bf16 = jax.jit(
        lambda p, a, b: unet_upconv_block(p, a, b, mxu_dtype=jnp.bfloat16))
    out_bf16 = jax.block_until_ready(fwd_bf16(params, inputs, encoder_features))
    assert bool(jnp.all(jnp.isfinite(out_bf16)))
    err_bf16 = float(jnp.max(jnp.abs(out_bf16 - ref)))
    assert err_bf16 < 1e-1, f"bf16 path max abs error {err_bf16}"

    print("KERNEL_OK")
</pallas_src>

<mosaic_0001>
module attributes {stable_mosaic.version = 11 : i64} {
  func.func @_unet_upconv_fused_kernel(%arg0: i32, %arg1: memref<1x32x32xf32, #tpu.memory_space<vmem>>, %arg2: memref<1x32x128xf32, #tpu.memory_space<vmem>>, %arg3: memref<32x1xf32, #tpu.memory_space<vmem>>, %arg4: memref<32x1xf32, #tpu.memory_space<vmem>>, %arg5: memref<3x32x128xf32, #tpu.memory_space<vmem>>, %arg6: memref<3x128x128xf32, #tpu.memory_space<vmem>>, %arg7: memref<3x128x128xf32, #tpu.memory_space<vmem>>, %arg8: memref<3x128x128xf32, #tpu.memory_space<vmem>>, %arg9: memref<3x128xf32, #tpu.memory_space<vmem>>, %arg10: memref<3x128xf32, #tpu.memory_space<vmem>>, %arg11: memref<3x128xf32, #tpu.memory_space<vmem>>, %arg12: memref<1x32x128xf32, #tpu.memory_space<vmem>>) attributes {dimension_semantics = [#tpu.dimension_semantics<parallel>], iteration_bounds = array<i64: 1>, scalar_prefetch = 0 : i64, scratch_operands = 0 : i64, tpu.core_type = #tpu.core_type<tc>, window_params = [{transform_indices = @transform_0, window_bounds = array<i64: 1, 32, 32>}, {transform_indices = @transform_1, window_bounds = array<i64: 1, 32, 128>}, {pipeline_mode = #tpu.pipeline_mode<synchronous>, transform_indices = @transform_2, window_bounds = array<i64: 32, 1>}, {pipeline_mode = #tpu.pipeline_mode<synchronous>, transform_indices = @transform_3, window_bounds = array<i64: 32, 1>}, {pipeline_mode = #tpu.pipeline_mode<synchronous>, transform_indices = @transform_4, window_bounds = array<i64: 3, 32, 128>}, {pipeline_mode = #tpu.pipeline_mode<synchronous>, transform_indices = @transform_5, window_bounds = array<i64: 3, 128, 128>}, {pipeline_mode = #tpu.pipeline_mode<synchronous>, transform_indices = @transform_6, window_bounds = array<i64: 3, 128, 128>}, {pipeline_mode = #tpu.pipeline_mode<synchronous>, transform_indices = @transform_7, window_bounds = array<i64: 3, 128, 128>}, {pipeline_mode = #tpu.pipeline_mode<synchronous>, transform_indices = @transform_8, window_bounds = array<i64: 3, 128>}, {pipeline_mode = #tpu.pipeline_mode<synchronous>, transform_indices = @transform_9, window_bounds = array<i64: 3, 128>}, {pipeline_mode = #tpu.pipeline_mode<synchronous>, transform_indices = @transform_10, window_bounds = array<i64: 3, 128>}, {transform_indices = @transform_11, window_bounds = array<i64: 1, 32, 128>}]} {
    %c0 = arith.constant 0 : index
    %c0_0 = arith.constant 0 : index
    %0 = vector.load %arg3[%c0, %c0_0] : memref<32x1xf32, #tpu.memory_space<vmem>>, vector<32x1xf32>
    %c0_1 = arith.constant 0 : index
    %c0_2 = arith.constant 0 : index
    %1 = vector.load %arg4[%c0_1, %c0_2] : memref<32x1xf32, #tpu.memory_space<vmem>>, vector<32x1xf32>
    %c0_3 = arith.constant 0 : index
    %c0_4 = arith.constant 0 : index
    %c0_5 = arith.constant 0 : index
    %2 = vector.load %arg1[%c0_3, %c0_4, %c0_5] : memref<1x32x32xf32, #tpu.memory_space<vmem>>, vector<1x32x32xf32>
    %3 = vector.shape_cast %2 : vector<1x32x32xf32> to vector<32x32xf32>
    %c0_6 = arith.constant 0 : index
    %c0_7 = arith.constant 0 : index
    %c0_8 = arith.constant 0 : index
    %4 = vector.load %arg2[%c0_6, %c0_7, %c0_8] : memref<1x32x128xf32, #tpu.memory_space<vmem>>, vector<1x32x128xf32>
    %5 = vector.shape_cast %4 : vector<1x32x128xf32> to vector<32x128xf32>
    %c1 = arith.constant 1 : index
    %c0_9 = arith.constant 0 : index
    %c0_10 = arith.constant 0 : index
    %6 = vector.load %arg5[%c1, %c0_9, %c0_10] : memref<3x32x128xf32, #tpu.memory_space<vmem>>, vector<1x32x128xf32>
    %7 = vector.shape_cast %6 : vector<1x32x128xf32> to vector<32x128xf32>
    %cst = arith.constant dense<0.000000e+00> : vector<32x128xf32>
    %8 = tpu.matmul %3, %7, %cst {dimension_numbers = #tpu.dot_dimension_numbers<[1], [0], [0], [1], [0, 0, 1, 1], [], []>} : vector<32x32xf32>, vector<32x128xf32>, vector<32x128xf32> -> vector<32x128xf32>
    %c0_11 = arith.constant 0 : index
    %c0_12 = arith.constant 0 : index
    %c0_13 = arith.constant 0 : index
    %9 = vector.load %arg5[%c0_11, %c0_12, %c0_13] : memref<3x32x128xf32, #tpu.memory_space<vmem>>, vector<1x32x128xf32>
    %10 = vector.shape_cast %9 : vector<1x32x128xf32> to vector<32x128xf32>
    %cst_14 = arith.constant dense<0.000000e+00> : vector<32x128xf32>
    %11 = tpu.matmul %3, %10, %cst_14 {dimension_numbers = #tpu.dot_dimension_numbers<[1], [0], [0], [1], [0, 0, 1, 1], [], []>} : vector<32x32xf32>, vector<32x128xf32>, vector<32x128xf32> -> vector<32x128xf32>
    %c1_i32 = arith.constant 1 : i32
    %12 = tpu.dynamic_rotate %11 by %c1_i32 dim 0 : vector<32x128xf32>, i32 -> vector<32x128xf32>
    %13 = vector.broadcast %0 : vector<32x1xf32> to vector<32x128xf32>
    %14 = arith.mulf %13, %12 : vector<32x128xf32>
    %15 = arith.addf %8, %14 : vector<32x128xf32>
    %c2 = arith.constant 2 : index
    %c0_15 = arith.constant 0 : index
    %c0_16 = arith.constant 0 : index
    %16 = vector.load %arg5[%c2, %c0_15, %c0_16] : memref<3x32x128xf32, #tpu.memory_space<vmem>>, vector<1x32x128xf32>
    %17 = vector.shape_cast %16 : vector<1x32x128xf32> to vector<32x128xf32>
    %cst_17 = arith.constant dense<0.000000e+00> : vector<32x128xf32>
    %18 = tpu.matmul %3, %17, %cst_17 {dimension_numbers = #tpu.dot_dimension_numbers<[1], [0], [0], [1], [0, 0, 1, 1], [], []>} : vector<32x32xf32>, vector<32x128xf32>, vector<32x128xf32> -> vector<32x128xf32>
    %c31_i32 = arith.constant 31 : i32
    %19 = tpu.dynamic_rotate %18 by %c31_i32 dim 0 : vector<32x128xf32>, i32 -> vector<32x128xf32>
    %20 = vector.broadcast %1 : vector<32x1xf32> to vector<32x128xf32>
    %21 = arith.mulf %20, %19 : vector<32x128xf32>
    %22 = arith.addf %15, %21 : vector<32x128xf32>
    %c0_18 = arith.constant 0 : index
    %c0_19 = arith.constant 0 : index
    %23 = vector.load %arg9[%c0_18, %c0_19] : memref<3x128xf32, #tpu.memory_space<vmem>>, vector<3x128xf32>
    %24 = vector.extract_strided_slice %23 {offsets = [0, 0], sizes = [1, 128], strides = [1, 1]} : vector<3x128xf32> to vector<1x128xf32>
    %25 = vector.broadcast %24 : vector<1x128xf32> to vector<32x128xf32>
    %26 = arith.addf %22, %25 : vector<32x128xf32>
    %cst_20 = arith.constant 0.000000e+00 : f32
    %27 = vector.broadcast %cst_20 : f32 to vector<32x128xf32>
    %28 = arith.maximumf %26, %27 : vector<32x128xf32>
    %29 = vector.extract_strided_slice %23 {offsets = [1, 0], sizes = [1, 128], strides = [1, 1]} : vector<3x128xf32> to vector<1x128xf32>
    %30 = vector.broadcast %29 : vector<1x128xf32> to vector<32x128xf32>
    %31 = arith.mulf %28, %30 : vector<32x128xf32>
    %32 = vector.extract_strided_slice %23 {offsets = [2, 0], sizes = [1, 128], strides = [1, 1]} : vector<3x128xf32> to vector<1x128xf32>
    %33 = vector.broadcast %32 : vector<1x128xf32> to vector<32x128xf32>
    %34 = arith.addf %31, %33 : vector<32x128xf32>
    %c1_21 = arith.constant 1 : index
    %c0_22 = arith.constant 0 : index
    %c0_23 = arith.constant 0 : index
    %35 = vector.load %arg6[%c1_21, %c0_22, %c0_23] : memref<3x128x128xf32, #tpu.memory_space<vmem>>, vector<1x128x128xf32>
    %36 = vector.shape_cast %35 : vector<1x128x128xf32> to vector<128x128xf32>
    %cst_24 = arith.constant dense<0.000000e+00> : vector<32x128xf32>
    %37 = tpu.matmul %34, %36, %cst_24 {dimension_numbers = #tpu.dot_dimension_numbers<[1], [0], [0], [1], [0, 0, 1, 1], [], []>} : vector<32x128xf32>, vector<128x128xf32>, vector<32x128xf32> -> vector<32x128xf32>
    %c1_25 = arith.constant 1 : index
    %c0_26 = arith.constant 0 : index
    %c0_27 = arith.constant 0 : index
    %38 = vector.load %arg7[%c1_25, %c0_26, %c0_27] : memref<3x128x128xf32, #tpu.memory_space<vmem>>, vector<1x128x128xf32>
    %39 = vector.shape_cast %38 : vector<1x128x128xf32> to vector<128x128xf32>
    %cst_28 = arith.constant dense<0.000000e+00> : vector<32x128xf32>
    %40 = tpu.matmul %5, %39, %cst_28 {dimension_numbers = #tpu.dot_dimension_numbers<[1], [0], [0], [1], [0, 0, 1, 1], [], []>} : vector<32x128xf32>, vector<128x128xf32>, vector<32x128xf32> -> vector<32x128xf32>
    %41 = arith.addf %37, %40 : vector<32x128xf32>
    %c0_29 = arith.constant 0 : index
    %c0_30 = arith.constant 0 : index
    %c0_31 = arith.constant 0 : index
    %42 = vector.load %arg6[%c0_29, %c0_30, %c0_31] : memref<3x128x128xf32, #tpu.memory_space<vmem>>, vector<1x128x128xf32>
    %43 = vector.shape_cast %42 : vector<1x128x128xf32> to vector<128x128xf32>
    %cst_32 = arith.constant dense<0.000000e+00> : vector<32x128xf32>
    %44 = tpu.matmul %34, %43, %cst_32 {dimension_numbers = #tpu.dot_dimension_numbers<[1], [0], [0], [1], [0, 0, 1, 1], [], []>} : vector<32x128xf32>, vector<128x128xf32>, vector<32x128xf32> -> vector<32x128xf32>
    %c0_33 = arith.constant 0 : index
    %c0_34 = arith.constant 0 : index
    %c0_35 = arith.constant 0 : index
    %45 = vector.load %arg7[%c0_33, %c0_34, %c0_35] : memref<3x128x128xf32, #tpu.memory_space<vmem>>, vector<1x128x128xf32>
    %46 = vector.shape_cast %45 : vector<1x128x128xf32> to vector<128x128xf32>
    %cst_36 = arith.constant dense<0.000000e+00> : vector<32x128xf32>
    %47 = tpu.matmul %5, %46, %cst_36 {dimension_numbers = #tpu.dot_dimension_numbers<[1], [0], [0], [1], [0, 0, 1, 1], [], []>} : vector<32x128xf32>, vector<128x128xf32>, vector<32x128xf32> -> vector<32x128xf32>
    %48 = arith.addf %44, %47 : vector<32x128xf32>
    %c1_i32_37 = arith.constant 1 : i32
    %49 = tpu.dynamic_rotate %48 by %c1_i32_37 dim 0 : vector<32x128xf32>, i32 -> vector<32x128xf32>
    %50 = vector.broadcast %0 : vector<32x1xf32> to vector<32x128xf32>
    %51 = arith.mulf %50, %49 : vector<32x128xf32>
    %52 = arith.addf %41, %51 : vector<32x128xf32>
    %c2_38 = arith.constant 2 : index
    %c0_39 = arith.constant 0 : index
    %c0_40 = arith.constant 0 : index
    %53 = vector.load %arg6[%c2_38, %c0_39, %c0_40] : memref<3x128x128xf32, #tpu.memory_space<vmem>>, vector<1x128x128xf32>
    %54 = vector.shape_cast %53 : vector<1x128x128xf32> to vector<128x128xf32>
    %cst_41 = arith.constant dense<0.000000e+00> : vector<32x128xf32>
    %55 = tpu.matmul %34, %54, %cst_41 {dimension_numbers = #tpu.dot_dimension_numbers<[1], [0], [0], [1], [0, 0, 1, 1], [], []>} : vector<32x128xf32>, vector<128x128xf32>, vector<32x128xf32> -> vector<32x128xf32>
    %c2_42 = arith.constant 2 : index
    %c0_43 = arith.constant 0 : index
    %c0_44 = arith.constant 0 : index
    %56 = vector.load %arg7[%c2_42, %c0_43, %c0_44] : memref<3x128x128xf32, #tpu.memory_space<vmem>>, vector<1x128x128xf32>
    %57 = vector.shape_cast %56 : vector<1x128x128xf32> to vector<128x128xf32>
    %cst_45 = arith.constant dense<0.000000e+00> : vector<32x128xf32>
    %58 = tpu.matmul %5, %57, %cst_45 {dimension_numbers = #tpu.dot_dimension_numbers<[1], [0], [0], [1], [0, 0, 1, 1], [], []>} : vector<32x128xf32>, vector<128x128xf32>, vector<32x128xf32> -> vector<32x128xf32>
    %59 = arith.addf %55, %58 : vector<32x128xf32>
    %c31_i32_46 = arith.constant 31 : i32
    %60 = tpu.dynamic_rotate %59 by %c31_i32_46 dim 0 : vector<32x128xf32>, i32 -> vector<32x128xf32>
    %61 = vector.broadcast %1 : vector<32x1xf32> to vector<32x128xf32>
    %62 = arith.mulf %61, %60 : vector<32x128xf32>
    %63 = arith.addf %52, %62 : vector<32x128xf32>
    %c0_47 = arith.constant 0 : index
    %c0_48 = arith.constant 0 : index
    %64 = vector.load %arg10[%c0_47, %c0_48] : memref<3x128xf32, #tpu.memory_space<vmem>>, vector<3x128xf32>
    %65 = vector.extract_strided_slice %64 {offsets = [0, 0], sizes = [1, 128], strides = [1, 1]} : vector<3x128xf32> to vector<1x128xf32>
    %66 = vector.broadcast %65 : vector<1x128xf32> to vector<32x128xf32>
    %67 = arith.addf %63, %66 : vector<32x128xf32>
    %cst_49 = arith.constant 0.000000e+00 : f32
    %68 = vector.broadcast %cst_49 : f32 to vector<32x128xf32>
    %69 = arith.maximumf %67, %68 : vector<32x128xf32>
    %70 = vector.extract_strided_slice %64 {offsets = [1, 0], sizes = [1, 128], strides = [1, 1]} : vector<3x128xf32> to vector<1x128xf32>
    %71 = vector.broadcast %70 : vector<1x128xf32> to vector<32x128xf32>
    %72 = arith.mulf %69, %71 : vector<32x128xf32>
    %73 = vector.extract_strided_slice %64 {offsets = [2, 0], sizes = [1, 128], strides = [1, 1]} : vector<3x128xf32> to vector<1x128xf32>
    %74 = vector.broadcast %73 : vector<1x128xf32> to vector<32x128xf32>
    %75 = arith.addf %72, %74 : vector<32x128xf32>
    %c1_50 = arith.constant 1 : index
    %c0_51 = arith.constant 0 : index
    %c0_52 = arith.constant 0 : index
    %76 = vector.load %arg8[%c1_50, %c0_51, %c0_52] : memref<3x128x128xf32, #tpu.memory_space<vmem>>, vector<1x128x128xf32>
    %77 = vector.shape_cast %76 : vector<1x128x128xf32> to vector<128x128xf32>
    %cst_53 = arith.constant dense<0.000000e+00> : vector<32x128xf32>
    %78 = tpu.matmul %75, %77, %cst_53 {dimension_numbers = #tpu.dot_dimension_numbers<[1], [0], [0], [1], [0, 0, 1, 1], [], []>} : vector<32x128xf32>, vector<128x128xf32>, vector<32x128xf32> -> vector<32x128xf32>
    %c0_54 = arith.constant 0 : index
    %c0_55 = arith.constant 0 : index
    %c0_56 = arith.constant 0 : index
    %79 = vector.load %arg8[%c0_54, %c0_55, %c0_56] : memref<3x128x128xf32, #tpu.memory_space<vmem>>, vector<1x128x128xf32>
    %80 = vector.shape_cast %79 : vector<1x128x128xf32> to vector<128x128xf32>
    %cst_57 = arith.constant dense<0.000000e+00> : vector<32x128xf32>
    %81 = tpu.matmul %75, %80, %cst_57 {dimension_numbers = #tpu.dot_dimension_numbers<[1], [0], [0], [1], [0, 0, 1, 1], [], []>} : vector<32x128xf32>, vector<128x128xf32>, vector<32x128xf32> -> vector<32x128xf32>
    %c1_i32_58 = arith.constant 1 : i32
    %82 = tpu.dynamic_rotate %81 by %c1_i32_58 dim 0 : vector<32x128xf32>, i32 -> vector<32x128xf32>
    %83 = vector.broadcast %0 : vector<32x1xf32> to vector<32x128xf32>
    %84 = arith.mulf %83, %82 : vector<32x128xf32>
    %85 = arith.addf %78, %84 : vector<32x128xf32>
    %c2_59 = arith.constant 2 : index
    %c0_60 = arith.constant 0 : index
    %c0_61 = arith.constant 0 : index
    %86 = vector.load %arg8[%c2_59, %c0_60, %c0_61] : memref<3x128x128xf32, #tpu.memory_space<vmem>>, vector<1x128x128xf32>
    %87 = vector.shape_cast %86 : vector<1x128x128xf32> to vector<128x128xf32>
    %cst_62 = arith.constant dense<0.000000e+00> : vector<32x128xf32>
    %88 = tpu.matmul %75, %87, %cst_62 {dimension_numbers = #tpu.dot_dimension_numbers<[1], [0], [0], [1], [0, 0, 1, 1], [], []>} : vector<32x128xf32>, vector<128x128xf32>, vector<32x128xf32> -> vector<32x128xf32>
    %c31_i32_63 = arith.constant 31 : i32
    %89 = tpu.dynamic_rotate %88 by %c31_i32_63 dim 0 : vector<32x128xf32>, i32 -> vector<32x128xf32>
    %90 = vector.broadcast %1 : vector<32x1xf32> to vector<32x128xf32>
    %91 = arith.mulf %90, %89 : vector<32x128xf32>
    %92 = arith.addf %85, %91 : vector<32x128xf32>
    %c0_64 = arith.constant 0 : index
    %c0_65 = arith.constant 0 : index
    %93 = vector.load %arg11[%c0_64, %c0_65] : memref<3x128xf32, #tpu.memory_space<vmem>>, vector<3x128xf32>
    %94 = vector.extract_strided_slice %93 {offsets = [0, 0], sizes = [1, 128], strides = [1, 1]} : vector<3x128xf32> to vector<1x128xf32>
    %95 = vector.broadcast %94 : vector<1x128xf32> to vector<32x128xf32>
    %96 = arith.addf %92, %95 : vector<32x128xf32>
    %cst_66 = arith.constant 0.000000e+00 : f32
    %97 = vector.broadcast %cst_66 : f32 to vector<32x128xf32>
    %98 = arith.maximumf %96, %97 : vector<32x128xf32>
    %99 = vector.extract_strided_slice %93 {offsets = [1, 0], sizes = [1, 128], strides = [1, 1]} : vector<3x128xf32> to vector<1x128xf32>
    %100 = vector.broadcast %99 : vector<1x128xf32> to vector<32x128xf32>
    %101 = arith.mulf %98, %100 : vector<32x128xf32>
    %102 = vector.extract_strided_slice %93 {offsets = [2, 0], sizes = [1, 128], strides = [1, 1]} : vector<3x128xf32> to vector<1x128xf32>
    %103 = vector.broadcast %102 : vector<1x128xf32> to vector<32x128xf32>
    %104 = arith.addf %101, %103 : vector<32x128xf32>
    %c0_67 = arith.constant 0 : index
    %c0_68 = arith.constant 0 : index
    %c0_69 = arith.constant 0 : index
    %105 = vector.load %arg12[%c0_67, %c0_68, %c0_69] : memref<1x32x128xf32, #tpu.memory_space<vmem>>, vector<1x32x128xf32>
    %106 = vector.shape_cast %105 : vector<1x32x128xf32> to vector<32x128xf32>
    %107 = vector.shape_cast %104 : vector<32x128xf32> to vector<1x32x128xf32>
    tpu.vector_store %arg12[%c0_67, %c0_68, %c0_69], %107 {strides = array<i32>} : memref<1x32x128xf32, #tpu.memory_space<vmem>>, vector<1x32x128xf32>,
    return
  }
  func.func @transform_0(%arg0: i32) -> (i32, i32, i32) {
    %c0_i32 = arith.constant 0 : i32
    %c0_i32_0 = arith.constant 0 : i32
    %c0_i32_1 = arith.constant 0 : i32
    return %arg0, %c0_i32, %c0_i32_0 : i32, i32, i32
  }
  func.func @transform_1(%arg0: i32) -> (i32, i32, i32) {
    %c0_i32 = arith.constant 0 : i32
    %c0_i32_0 = arith.constant 0 : i32
    %c0_i32_1 = arith.constant 0 : i32
    return %arg0, %c0_i32, %c0_i32_0 : i32, i32, i32
  }
  func.func @transform_2(%arg0: i32) -> (i32, i32) {
    %c0_i32 = arith.constant 0 : i32
    %c0_i32_0 = arith.constant 0 : i32
    %c0_i32_1 = arith.constant 0 : i32
    return %c0_i32, %c0_i32_0 : i32, i32
  }
  func.func @transform_3(%arg0: i32) -> (i32, i32) {
    %c0_i32 = arith.constant 0 : i32
    %c0_i32_0 = arith.constant 0 : i32
    %c0_i32_1 = arith.constant 0 : i32
    return %c0_i32, %c0_i32_0 : i32, i32
  }
  func.func @transform_4(%arg0: i32) -> (i32, i32, i32) {
    %c0_i32 = arith.constant 0 : i32
    %c0_i32_0 = arith.constant 0 : i32
    %c0_i32_1 = arith.constant 0 : i32
    %c0_i32_2 = arith.constant 0 : i32
    return %c0_i32, %c0_i32_0, %c0_i32_1 : i32, i32, i32
  }
  func.func @transform_5(%arg0: i32) -> (i32, i32, i32) {
    %c0_i32 = arith.constant 0 : i32
    %c0_i32_0 = arith.constant 0 : i32
    %c0_i32_1 = arith.constant 0 : i32
    %c0_i32_2 = arith.constant 0 : i32
    return %c0_i32, %c0_i32_0, %c0_i32_1 : i32, i32, i32
  }
  func.func @transform_6(%arg0: i32) -> (i32, i32, i32) {
    %c0_i32 = arith.constant 0 : i32
    %c0_i32_0 = arith.constant 0 : i32
    %c0_i32_1 = arith.constant 0 : i32
    %c0_i32_2 = arith.constant 0 : i32
    return %c0_i32, %c0_i32_0, %c0_i32_1 : i32, i32, i32
  }
  func.func @transform_7(%arg0: i32) -> (i32, i32, i32) {
    %c0_i32 = arith.constant 0 : i32
    %c0_i32_0 = arith.constant 0 : i32
    %c0_i32_1 = arith.constant 0 : i32
    %c0_i32_2 = arith.constant 0 : i32
    return %c0_i32, %c0_i32_0, %c0_i32_1 : i32, i32, i32
  }
  func.func @transform_8(%arg0: i32) -> (i32, i32) {
    %c0_i32 = arith.constant 0 : i32
    %c0_i32_0 = arith.constant 0 : i32
    %c0_i32_1 = arith.constant 0 : i32
    return %c0_i32, %c0_i32_0 : i32, i32
  }
  func.func @transform_9(%arg0: i32) -> (i32, i32) {
    %c0_i32 = arith.constant 0 : i32
    %c0_i32_0 = arith.constant 0 : i32
    %c0_i32_1 = arith.constant 0 : i32
    return %c0_i32, %c0_i32_0 : i32, i32
  }
  func.func @transform_10(%arg0: i32) -> (i32, i32) {
    %c0_i32 = arith.constant 0 : i32
    %c0_i32_0 = arith.constant 0 : i32
    %c0_i32_1 = arith.constant 0 : i32
    return %c0_i32, %c0_i32_0 : i32, i32
  }
  func.func @transform_11(%arg0: i32) -> (i32, i32, i32) {
    %c0_i32 = arith.constant 0 : i32
    %c0_i32_0 = arith.constant 0 : i32
    %c0_i32_1 = arith.constant 0 : i32
    return %arg0, %c0_i32, %c0_i32_0 : i32, i32, i32
  }
}

</mosaic_0001>

<bundles_post_ra>
// kernel: tile.48
= control target key start
LH: loop header
LB: loop body
LE: loop exit
PB: predicated region body
PF: predicated region fallthrough
CT: control target
= control target key end

     0   :  { %s28_s0 = inlined_call_operand.vmem [shape: f32[8], index: 0, kind: input, shape index: {}]   ;;  %s29_s1 = inlined_call_operand.vmem [shape: f32[16,8], index: 1, kind: output, shape index: {}]  }
   0x1   :  { %v4_v0 = vld [vmem:[%s28_s0] ss:$0 sm:$0xff] }
   0x2   :  { %5 = vst [vmem:[%s29_s1] sm:$0xff] %v4_v0  ;;  %8 = vst [vmem:[%s29_s1 + $0x8] sm:$0xff] %v4_v0 }

// kernel: tile.57
= control target key start
LH: loop header
LB: loop body
LE: loop exit
PB: predicated region body
PF: predicated region fallthrough
CT: control target
= control target key end

     0   :  { %s131_s10 = smov 120   ;;  %s132_s11 = smov 104   ;;  %vm3_vm0 = vcmask 64512   ;;  %vm9_vm1 = vcmask 1048512   ;;  %vm15_vm2 = vcmask 982912   ;;  %vm21_vm3 = vcmask 917312   ;;  %s207_s0 = inlined_call_operand.vmem [shape: f32[16,8], index: 0, kind: input, shape index: {}]   ;;  %s208_s1 = inlined_call_operand.vmem [shape: f32[1,128], index: 1, kind: output, shape index: {}]  }
   0x1   :  { %v101_v0 = vld [vmem:[%s207_s0 + $0xf] sm:$0x1]   ;;  %v103_v1 = vld [vmem:[%s207_s0 + $0xd] sm:$0x1]   ;;  %v102_v2 = vld [vmem:[%s207_s0 + $0xe] sm:$0x1]  }
   0x2   :  { %7 = vrot.lane.b32.xlu0 %v101_v0, %s131_s10  ;;  %19 = vrot.lane.b32.xlu1 %v103_v1, %s132_s11  ;;  %v104_v3 = vld [vmem:[%s207_s0 + $0xc] sm:$0x1]   ;;  %s133_s16 = smov 112   ;;  %s134_s17 = smov 96   ;;  %v105_v4 = vld [vmem:[%s207_s0 + $0xb] sm:$0x1]  }
   0x3   :  { %v106_v5 = vld [vmem:[%s207_s0 + $0xa] sm:$0x1]   ;;  %v2_v6 = vld [vmem:[%s207_s0] sm:$0x1]   ;;  %s135_s24 = smov 88   ;;  %s136_s25 = smov 80  }
   0x4   :  { %4 = vst.msk [vmem:[#allocation0] sm:$0x1] %vm3_vm0, %v2_v6   ;;  %v107_v7 = vld [vmem:[%s207_s0 + $0x9] sm:$0x1]   ;;  %v108_v8 = vld [vmem:[%s207_s0 + $0x8] sm:$0x1]  }
   0x5   :  { %s137_s30 = smov 72   ;;  %s138_s2 = smov 64   ;;  %v109_v9 = vld [vmem:[%s207_s0 + $0x7] sm:$0x1]   ;;  %v110_v10 = vld [vmem:[%s207_s0 + $0x6] sm:$0x1]  }
   0x6   :  { %13 = vrot.lane.b32.xlu0 %v102_v2, %s133_s16  ;;  %25 = vrot.lane.b32.xlu1 %v104_v3, %s134_s17  ;;  %s139_s7 = smov 56   ;;  %s140_s8 = smov 48   ;;  %v111_v11 = vld [vmem:[%s207_s0 + $0x5] sm:$0x1]   ;;  %v112_v12 = vld [vmem:[%s207_s0 + $0x4] sm:$0x1]  }
   0x7   :  { %s141_s13 = smov 40   ;;  %s142_s14 = smov 32   ;;  %v113_v13 = vld [vmem:[%s207_s0 + $0x3] sm:$0x1]   ;;  %v114_v14 = vld [vmem:[%s207_s0 + $0x2] sm:$0x1]  }
   0x8   :  { %s143_s19 = smov 24   ;;  %s144_s20 = smov 16   ;;  %v115_v15 = vld [vmem:[%s207_s0 + $0x1] sm:$0x1]   ;;  %vm27_vm4 = vcmask 851712   ;;  %vm33_vm5 = vcmask 786112  }
   0x9   :  { %s145_s0 = smov 8   ;;  %vm39_vm6 = vcmask 720512   ;;  %vm45_vm7 = vcmask 654912   ;;  %vm51_vm8 = vcmask 589312   ;;  %vm57_vm9 = vcmask 523712  }
   0xa   :  { %31 = vrot.lane.b32.xlu0 %v105_v4, %s135_s24  ;;  %37 = vrot.lane.b32.xlu1 %v106_v5, %s136_s25  ;;  %vm63_vm10 = vcmask 458112   ;;  %vm69_vm11 = vcmask 392512   ;;  %vm75_vm12 = vcmask 326912   ;;  %vm81_vm13 = vcmask 261312  }
   0xb   :  { %vm87_vm14 = vcmask 195712   ;;  %vm93_vm15 = vcmask 130112  }
   0xe   :  { %43 = vrot.lane.b32.xlu0 %v107_v7, %s137_s30  ;;  %49 = vrot.lane.b32.xlu1 %v108_v8, %s138_s2 }
  0x12   :  { %55 = vrot.lane.b32.xlu0 %v109_v9, %s139_s7  ;;  %61 = vrot.lane.b32.xlu1 %v110_v10, %s140_s8 }
  0x16   :  { %67 = vrot.lane.b32.xlu0 %v111_v11, %s141_s13  ;;  %73 = vrot.lane.b32.xlu1 %v112_v12, %s142_s14 }
  0x1a   :  { %79 = vrot.lane.b32.xlu0 %v113_v13, %s143_s19  ;;  %85 = vrot.lane.b32.xlu1 %v114_v14, %s144_s20 }
  0x1e   :  { %91 = vrot.lane.b32.xlu0 %v115_v15, %s145_s0 }
  0x74   :  { %v8_v16 = vpop.permute.xlu0 %7   ;;  %v20_v17 = vpop.permute.xlu1 %19  }
  0x75   :  { %10 = vst.msk [vmem:[#allocation0] sm:$0x1] %vm9_vm1, %v8_v16  }
  0x78   :  { %v14_v18 = vpop.permute.xlu0 %13   ;;  %v26_v19 = vpop.permute.xlu1 %25  }
  0x79   :  { %16 = vst.msk [vmem:[#allocation0] sm:$0x1] %vm15_vm2, %v14_v18  }
  0x7a   :  { %22 = vst.msk [vmem:[#allocation0] sm:$0x1] %vm21_vm3, %v20_v17  }
  0x7b   :  { %28 = vst.msk [vmem:[#allocation0] sm:$0x1] %vm27_vm4, %v26_v19  }
  0x7c   :  { %v32_v20 = vpop.permute.xlu0 %31   ;;  %v38_v21 = vpop.permute.xlu1 %37  }
  0x7d   :  { %34 = vst.msk [vmem:[#allocation0] sm:$0x1] %vm33_vm5, %v32_v20  }
  0x7e   :  { %40 = vst.msk [vmem:[#allocation0] sm:$0x1] %vm39_vm6, %v38_v21  }
  0x80   :  { %v44_v22 = vpop.permute.xlu0 %43   ;;  %v50_v23 = vpop.permute.xlu1 %49  }
  0x81   :  { %46 = vst.msk [vmem:[#allocation0] sm:$0x1] %vm45_vm7, %v44_v22  }
  0x82   :  { %52 = vst.msk [vmem:[#allocation0] sm:$0x1] %vm51_vm8, %v50_v23  }
  0x84   :  { %v56_v24 = vpop.permute.xlu0 %55   ;;  %v62_v25 = vpop.permute.xlu1 %61  }
  0x85   :  { %58 = vst.msk [vmem:[#allocation0] sm:$0x1] %vm57_vm9, %v56_v24  }
  0x86   :  { %64 = vst.msk [vmem:[#allocation0] sm:$0x1] %vm63_vm10, %v62_v25  }
  0x88   :  { %v68_v26 = vpop.permute.xlu0 %67   ;;  %v74_v27 = vpop.permute.xlu1 %73  }
  0x89   :  { %70 = vst.msk [vmem:[#allocation0] sm:$0x1] %vm69_vm11, %v68_v26  }
  0x8a   :  { %76 = vst.msk [vmem:[#allocation0] sm:$0x1] %vm75_vm12, %v74_v27  }
  0x8c   :  { %v80_v28 = vpop.permute.xlu0 %79   ;;  %v86_v29 = vpop.permute.xlu1 %85  }
  0x8d   :  { %82 = vst.msk [vmem:[#allocation0] sm:$0x1] %vm81_vm13, %v80_v28  }
  0x8e   :  { %88 = vst.msk [vmem:[#allocation0] sm:$0x1] %vm87_vm14, %v86_v29  }
  0x90   :  { %v92_v30 = vpop.permute.xlu0 %91  }
  0x91   :  { %94 = vst.msk [vmem:[#allocation0] sm:$0x1] %vm93_vm15, %v92_v30  }
  0x98   :  { %v98_v31 = vld [vmem:[#allocation0] sm:$0x1] }
  0x99   :  { %100 = vst [vmem:[%s208_s1] sm:$0x1] %v98_v31 }

// kernel: _lambda_.1
= control target key start
LH: loop header
LB: loop body
LE: loop exit
PB: predicated region body
PF: predicated region fallthrough
CT: control target
= control target key end

     0   :  { %vm63_vm0 = vcmask 261120   ;;  %v2509_v3 = vmov 0   ;;  %s3297_s4 = inlined_call_operand.vmem [shape: f32[3,32,128], index: 4, kind: input, shape index: {}]   ;;  %s3298_s0 = inlined_call_operand.vmem [shape: f32[1,32,32], index: 0, kind: input, shape index: {}]   ;;  %s3299_s3 = inlined_call_operand.vmem [shape: f32[32,1], index: 3, kind: input, shape index: {}]   ;;  %s3300_s2 = inlined_call_operand.vmem [shape: f32[32,1], index: 2, kind: input, shape index: {}]   ;;  %s3301_s6 = inlined_call_operand.vmem [shape: f32[3,128,128], index: 6, kind: input, shape index: {}]   ;;  %s3302_s5 = inlined_call_operand.vmem [shape: f32[3,128,128], index: 5, kind: input, shape index: {}]   ;;  %s3303_s1 = inlined_call_operand.vmem [shape: f32[1,32,128], index: 1, kind: input, shape index: {}]   ;;  %s3304_s8 = inlined_call_operand.vmem [shape: f32[3,128], index: 8, kind: input, shape index: {}]   ;;  %s3305_s7 = inlined_call_operand.vmem [shape: f32[3,128,128], index: 7, kind: input, shape index: {}]   ;;  %s3306_s9 = inlined_call_operand.vmem [shape: f32[3,128], index: 9, kind: input, shape index: {}]   ;;  %s3307_s10 = inlined_call_operand.vmem [shape: f32[3,128], index: 10, kind: input, shape index: {}]   ;;  %s3308_s11 = inlined_call_operand.vmem [shape: f32[1,32,128], index: 11, kind: output, shape index: {}]  }
   0x1   :  { %v59_v0 = vld [vmem:[%s3297_s4] sm:$0xff]  ;;  %v60_v1 = vld [vmem:[%s3297_s4 + $0x8] sm:$0xff]  ;;  %v61_v2 = vld [vmem:[%s3297_s4 + $0x10] sm:$0xff]  ;;  %2508 = vset.pattern.permute.xlu1 %v2509_v3  ;;  %2507 = vset.pattern.permute.xlu0 %v2509_v3 }
   0x2   :  { %v2182_v4 = vpack.c.bf16 %v60_v1, %v59_v0  ;;  %v62_v5 = vld [vmem:[%s3297_s4 + $0x18] sm:$0xff]  ;;  %v2585_v6 = vld [vmem:[%s3298_s0] sm:$0xff]  ;;  %v1479_v9 = vld [vmem:[%s3297_s4 + $0x28] sm:$0xff] }
   0x3   :  { %v2186_v7 = vpack.c.bf16 %v62_v5, %v61_v2  ;;  %1806 = vmatprep.mubr.msk.f32.mxu0 %vm63_vm0, %v2585_v6  ;;  %v1478_v8 = vld [vmem:[%s3297_s4 + $0x20] sm:$0xff]  ;;  %v1480_v13 = vld [vmem:[%s3297_s4 + $0x30] sm:$0xff]  ;;  %v1481_v14 = vld [vmem:[%s3297_s4 + $0x38] sm:$0xff] }
   0x4   :  { %2183 = vmatprep.subr.bf16.mxu0 %v2182_v4  ;;  %v2190_v10 = vpack.c.bf16 %v1479_v9, %v1478_v8  ;;  %v42_v11 = vld [vmem:[%s3299_s3] sm:$0xff]  ;;  %v43_v15 = vld [vmem:[%s3299_s3 + $0x8] sm:$0xff]  ;;  %v2627_v20 = vld [vmem:[%s3298_s0 + $0x10] sm:$0xff]  ;;  %v2194_v21 = vpack.c.bf16 %v1481_v14, %v1480_v13 }
   0x5   :  { %2185 = vmatpush3.bf16.msra.mxu0 %v2182_v4  ;;  %v38_v12 = vld [vmem:[%s3300_s2] sm:$0xff]  ;;  %382 = vperm.xlu1 %2508, %v42_v11   ;;  %v39_v16 = vld [vmem:[%s3300_s2 + $0x8] sm:$0xff]  ;;  %v1516_v23 = vld [vmem:[%s3301_s6 + $0x90] sm:$0xff] }
   0x6   :  { %2187 = vmatprep.subr.bf16.mxu0 %v2186_v7  ;;  %174 = vperm.xlu0 %2507, %v38_v12   ;;  %v2616_v17 = vld [vmem:[%s3298_s0 + $0x8] sm:$0xff]  ;;  %v1514_v18 = vld [vmem:[%s3301_s6 + $0x80] sm:$0xff]  ;;  %v1517_v24 = vld [vmem:[%s3301_s6 + $0x98] sm:$0xff] }
   0x7   :  { %v1515_v19 = vld [vmem:[%s3301_s6 + $0x88] sm:$0xff]  ;;  %v1490_v25 = vld [vmem:[%s3297_s4 + $0x40] sm:$0xff]  ;;  %v41_v27 = vld [vmem:[%s3300_s2 + $0x18] sm:$0xff]  ;;  %v2210_v29 = vpack.c.bf16 %v1517_v24, %v1516_v23 }
   0x8   :  { %v2206_v22 = vpack.c.bf16 %v1515_v19, %v1514_v18  ;;  %v1491_v26 = vld [vmem:[%s3297_s4 + $0x48] sm:$0xff]  ;;  %v40_v28 = vld [vmem:[%s3300_s2 + $0x10] sm:$0xff]  ;;  %v2654_v30 = vld [vmem:[%s3298_s0 + $0x18] sm:$0xff] }
   0x9   :  { %2189 = vmatpush3.bf16.msra.mxu0 %v2186_v7  ;;  %387 = vperm.xlu1 %2508, %v43_v15   ;;  %v1518_v31 = vld [vmem:[%s3301_s6 + $0xa0] sm:$0xff]  ;;  %v1519_v32 = vld [vmem:[%s3301_s6 + $0xa8] sm:$0xff]  ;;  %v2198_v33 = vpack.c.bf16 %v1491_v26, %v1490_v25  ;;  %v1492_v34 = vld [vmem:[%s3297_s4 + $0x50] sm:$0xff] }
   0xa   :  { %2191 = vmatprep.subr.bf16.mxu0 %v2190_v10  ;;  %179 = vperm.xlu0 %2507, %v39_v16   ;;  %v1493_v35 = vld [vmem:[%s3297_s4 + $0x58] sm:$0xff]  ;;  %v44_v36 = vld [vmem:[%s3299_s3 + $0x10] sm:$0xff]  ;;  %v2214_v38 = vpack.c.bf16 %v1519_v32, %v1518_v31  ;;  %v657_v42 = vld [vmem:[%s3301_s6] sm:$0xff] }
   0xb   :  { %2207 = vmatprep.subr.bf16.mxu1 %v2206_v22  ;;  %v45_v37 = vld [vmem:[%s3299_s3 + $0x18] sm:$0xff]  ;;  %v1520_v39 = vld [vmem:[%s3301_s6 + $0xb0] sm:$0xff]  ;;  %v2202_v41 = vpack.c.bf16 %v1493_v35, %v1492_v34  ;;  %v658_v43 = vld [vmem:[%s3301_s6 + $0x8] sm:$0xff] }
   0xc   :  { %1807 = vmatmul.mubr.msk.f32.vlgmr.msra.gmra.mrb[0].mxu0 %vm63_vm0, %v2616_v17  ;;  %2209 = vmatpush3.bf16.msra.mxu1 %v2206_v22  ;;  %v1521_v40 = vld [vmem:[%s3301_s6 + $0xb8] sm:$0xff]  ;;  %v1522_v45 = vld [vmem:[%s3301_s6 + $0xc0] sm:$0xff]  ;;  %v1523_v46 = vld [vmem:[%s3301_s6 + $0xc8] sm:$0xff]  ;;  %v2270_v47 = vpack.c.bf16 %v658_v43, %v657_v42 }
   0xd   :  { %2193 = vmatpush3.bf16.msra.mxu0 %v2190_v10  ;;  %1809 = vmatprep.mubr.msk.f32.mxu0 %vm63_vm0, %v2627_v20  ;;  %v2218_v44 = vpack.c.bf16 %v1521_v40, %v1520_v39  ;;  %v659_v48 = vld [vmem:[%s3301_s6 + $0x10] sm:$0xff]  ;;  %v660_v49 = vld [vmem:[%s3301_s6 + $0x18] sm:$0xff]  ;;  %v2222_v50 = vpack.c.bf16 %v1523_v46, %v1522_v45  ;;  %v661_v54 = vld [vmem:[%s3301_s6 + $0x20] sm:$0xff] }
   0xe   :  { %2195 = vmatprep.subr.bf16.mxu0 %v2194_v21  ;;  %189 = vperm.xlu1 %2508, %v41_v27   ;;  %v1524_v51 = vld [vmem:[%s3301_s6 + $0xd0] sm:$0xff]  ;;  %v1525_v52 = vld [vmem:[%s3301_s6 + $0xd8] sm:$0xff]  ;;  %v2274_v53 = vpack.c.bf16 %v660_v49, %v659_v48  ;;  %v662_v55 = vld [vmem:[%s3301_s6 + $0x28] sm:$0xff] }
   0xf   :  { %184 = vperm.xlu0 %2507, %v40_v28   ;;  %2211 = vmatprep.subr.bf16.mxu1 %v2210_v29  ;;  %v2226_v56 = vpack.c.bf16 %v1525_v52, %v1524_v51  ;;  %v1526_v57 = vld [vmem:[%s3301_s6 + $0xe0] sm:$0xff]  ;;  %v1527_v58 = vld [vmem:[%s3301_s6 + $0xe8] sm:$0xff]  ;;  %v2278_v59 = vpack.c.bf16 %v662_v55, %v661_v54  ;;  %v663_v60 = vld [vmem:[%s3301_s6 + $0x30] sm:$0xff] }
  0x10   :  { %1810 = vmatmul.mubr.msk.f32.gmra.mrb[2].mxu0 %vm63_vm0, %v2654_v30  ;;  %2213 = vmatpush3.bf16.msra.mxu1 %v2210_v29  ;;  %v664_v61 = vld [vmem:[%s3301_s6 + $0x38] sm:$0xff]  ;;  %v2230_v62 = vpack.c.bf16 %v1527_v58, %v1526_v57  ;;  %v1528_v63 = vld [vmem:[%s3301_s6 + $0xf0] sm:$0xff]  ;;  %v665_v2 = vld [vmem:[%s3301_s6 + $0x40] sm:$0xff] }
  0x11   :  { %2197 = vmatpush3.bf16.msra.mxu0 %v2194_v21  ;;  %1820 = vmatprep.mubr.msk.f32.mxu0 %vm63_vm0, %v2585_v6  ;;  %v1529_v0 = vld [vmem:[%s3301_s6 + $0xf8] sm:$0xff]  ;;  %v2282_v1 = vpack.c.bf16 %v664_v61, %v663_v60  ;;  %v666_v3 = vld [vmem:[%s3301_s6 + $0x48] sm:$0xff]  ;;  %v669_v9 = vld [vmem:[%s3301_s6 + $0x60] sm:$0xff] }
  0x12   :  { %2199 = vmatprep.subr.bf16.mxu0 %v2198_v33  ;;  %397 = vperm.xlu1 %2508, %v45_v37   ;;  %v2234_v4 = vpack.c.bf16 %v1529_v0, %v1528_v63  ;;  %v2286_v5 = vpack.c.bf16 %v666_v3, %v665_v2  ;;  %v668_v7 = vld [vmem:[%s3301_s6 + $0x58] sm:$0xff]  ;;  %v670_v10 = vld [vmem:[%s3301_s6 + $0x68] sm:$0xff]  ;;  %v671_v12 = vld [vmem:[%s3301_s6 + $0x70] sm:$0xff] }
  0x13   :  { %392 = vperm.xlu0 %2507, %v44_v36   ;;  %2215 = vmatprep.subr.bf16.mxu1 %v2214_v38  ;;  %v2294_v11 = vpack.c.bf16 %v670_v10, %v669_v9  ;;  %v672_v13 = vld [vmem:[%s3301_s6 + $0x78] sm:$0xff]  ;;  %v1498_v15 = vld [vmem:[%s3302_s5 + $0x80] sm:$0xff]  ;;  %v1499_v16 = vld [vmem:[%s3302_s5 + $0x88] sm:$0xff] }
  0x14   :  { %1821 = vmatmul.mubr.msk.f32.vlgmr.msra.gmra.mrb[4].mxu0 %vm63_vm0, %v2616_v17  ;;  %2217 = vmatpush3.bf16.msra.mxu1 %v2214_v38  ;;  %v2298_v14 = vpack.c.bf16 %v672_v13, %v671_v12  ;;  %v641_v18 = vld [vmem:[%s3302_s5] sm:$0xff]  ;;  %v642_v19 = vld [vmem:[%s3302_s5 + $0x8] sm:$0xff]  ;;  %v1500_v23 = vld [vmem:[%s3302_s5 + $0x90] sm:$0xff] }
  0x15   :  { %2201 = vmatpush3.bf16.msra.mxu0 %v2198_v33  ;;  %1823 = vmatprep.mubr.msk.f32.mxu0 %vm63_vm0, %v2627_v20  ;;  %v2302_v21 = vpack.c.bf16 %v642_v19, %v641_v18  ;;  %v2791_v22 = vld [vmem:[%s3303_s1 + $0x8] sm:$0xff]  ;;  %v1501_v24 = vld [vmem:[%s3302_s5 + $0x98] sm:$0xff]  ;;  %v643_v26 = vld [vmem:[%s3302_s5 + $0x10] sm:$0xff] }
  0x16   :  { %2203 = vmatprep.subr.bf16.mxu0 %v2202_v41  ;;  %2219 = vmatprep.subr.bf16.mxu1 %v2218_v44  ;;  %v2242_v25 = vpack.c.bf16 %v1501_v24, %v1500_v23  ;;  %v644_v27 = vld [vmem:[%s3302_s5 + $0x18] sm:$0xff]  ;;  %v1502_v29 = vld [vmem:[%s3302_s5 + $0xa0] sm:$0xff]  ;;  %v646_v33 = vld [vmem:[%s3302_s5 + $0x28] sm:$0xff] }
  0x17   :  { %v2306_v28 = vpack.c.bf16 %v644_v27, %v643_v26  ;;  %v645_v32 = vld [vmem:[%s3302_s5 + $0x20] sm:$0xff]  ;;  %v1504_v35 = vld [vmem:[%s3302_s5 + $0xb0] sm:$0xff]  ;;  %v1505_v36 = vld [vmem:[%s3302_s5 + $0xb8] sm:$0xff] }
  0x18   :  { %1824 = vmatmul.mubr.msk.f32.gmra.mrb[6].mxu0 %vm63_vm0, %v2654_v30  ;;  %2221 = vmatpush3.bf16.msra.mxu1 %v2218_v44  ;;  %v2310_v34 = vpack.c.bf16 %v646_v33, %v645_v32  ;;  %v2250_v37 = vpack.c.bf16 %v1505_v36, %v1504_v35  ;;  %v647_v38 = vld [vmem:[%s3302_s5 + $0x30] sm:$0xff]  ;;  %v648_v39 = vld [vmem:[%s3302_s5 + $0x38] sm:$0xff]  ;;  %v1507_v42 = vld [vmem:[%s3302_s5 + $0xc8] sm:$0xff] }
  0x19   :  { %2205 = vmatpush3.bf16.msra.mxu0 %v2202_v41  ;;  %1834 = vmatprep.mubr.msk.f32.mxu0 %vm63_vm0, %v2585_v6  ;;  %v667_v6 = vld [vmem:[%s3301_s6 + $0x50] sm:$0xff]  ;;  %v2314_v40 = vpack.c.bf16 %v648_v39, %v647_v38  ;;  %v1506_v41 = vld [vmem:[%s3302_s5 + $0xc0] sm:$0xff]  ;;  %v650_v45 = vld [vmem:[%s3302_s5 + $0x48] sm:$0xff] }
  0x1a   :  { %2271 = vmatprep.subr.bf16.mxu0 %v2270_v47  ;;  %2223 = vmatprep.subr.bf16.mxu1 %v2222_v50  ;;  %v2290_v8 = vpack.c.bf16 %v668_v7, %v667_v6  ;;  %v2254_v43 = vpack.c.bf16 %v1507_v42, %v1506_v41  ;;  %v649_v44 = vld [vmem:[%s3302_s5 + $0x40] sm:$0xff]  ;;  %v1509_v48 = vld [vmem:[%s3302_s5 + $0xd8] sm:$0xff]  ;;  %v1511_v54 = vld [vmem:[%s3302_s5 + $0xe8] sm:$0xff]  ;;  %v165_v6 = vlaneseq }
  0x1b   :  { %v2318_v46 = vpack.c.bf16 %v650_v45, %v649_v44  ;;  %v652_v51 = vld [vmem:[%s3302_s5 + $0x58] sm:$0xff]  ;;  %v654_v57 = vld [vmem:[%s3302_s5 + $0x68] sm:$0xff]  ;;  %v2877_v61 = vld [vmem:[%s3303_s1 + $0x10] sm:$0xff] }
  0x1c   :  { %1835 = vmatmul.mubr.msk.f32.vlgmr.msra.gmra.mrb[8].mxu0 %vm63_vm0, %v2616_v17  ;;  %2225 = vmatpush3.bf16.msra.mxu1 %v2222_v50  ;;  %v2238_v17 = vpack.c.bf16 %v1499_v16, %v1498_v15  ;;  %v651_v50 = vld [vmem:[%s3302_s5 + $0x50] sm:$0xff]  ;;  %v1513_v60 = vld [vmem:[%s3302_s5 + $0xf8] sm:$0xff]  ;;  %v1546_v3 = vld [vmem:[%s3301_s6 + $0x100] sm:$0xff]  ;;  %v2907_v9 = vshrl.u32 %v165_v6, 7 }
  0x1d   :  { %1837 = vmatprep.mubr.msk.f32.mxu0 %vm63_vm0, %v2627_v20  ;;  %2273 = vmatpush3.bf16.msra.mxu0 %v2270_v47  ;;  %v2785_v20 = vld [vmem:[%s3303_s1] sm:$0xff]  ;;  %v1508_v47 = vld [vmem:[%s3302_s5 + $0xd0] sm:$0xff]  ;;  %v2322_v52 = vpack.c.bf16 %v652_v51, %v651_v50  ;;  %v656_v0 = vld [vmem:[%s3302_s5 + $0x78] sm:$0xff] }
  0x1e   :  { %2275 = vmatprep.subr.bf16.mxu0 %v2274_v53  ;;  %2227 = vmatprep.subr.bf16.mxu1 %v2226_v56  ;;  %v2258_v49 = vpack.c.bf16 %v1509_v48, %v1508_v47  ;;  %v655_v63 = vld [vmem:[%s3302_s5 + $0x70] sm:$0xff]  ;;  %vm167_vm1 = vcmp.lt.s32.totalorder %v2907_v9, 1  ;;  %vm375_vm2 = vcmp.lt.s32.totalorder %v2907_v9, 7  ;;  %v408_v45 = vld [vmem:[%s3304_s8] sm:$0x7] }
  0x1f   :  { %1872 = vmatprep.mubr.f32.mxu1 %v2785_v20  ;;  %v2330_v2 = vpack.c.bf16 %v656_v0, %v655_v63 }
  0x20   :  { %1838 = vmatmul.mubr.msk.f32.gmra.mrb[10].mxu0 %vm63_vm0, %v2654_v30  ;;  %2229 = vmatpush3.bf16.msra.mxu1 %v2226_v56  ;;  %v1503_v30 = vld [vmem:[%s3302_s5 + $0xa8] sm:$0xff]  ;;  %v653_v56 = vld [vmem:[%s3302_s5 + $0x60] sm:$0xff] }
  0x21   :  { %2277 = vmatpush3.bf16.msra.mxu0 %v2274_v53  ;;  %2231 = vmatprep.subr.bf16.mxu1 %v2230_v62  ;;  %v2246_v31 = vpack.c.bf16 %v1503_v30, %v1502_v29  ;;  %v1510_v53 = vld [vmem:[%s3302_s5 + $0xe0] sm:$0xff]  ;;  %v2326_v58 = vpack.c.bf16 %v654_v57, %v653_v56  ;;  %v2949_v57 = vsub.s32 2, %v2907_v9 }
  0x22   :  { %2279 = vmatprep.subr.bf16.mxu0 %v2278_v59  ;;  %1948 = vmatprep.mubr.f32.mxu0 %v2785_v20  ;;  %v2262_v55 = vpack.c.bf16 %v1511_v54, %v1510_v53 }
  0x24   :  { %2233 = vmatpush3.bf16.msra.mxu1 %v2230_v62 }
  0x25   :  { %2281 = vmatpush3.bf16.msra.mxu0 %v2278_v59  ;;  %2235 = vmatprep.subr.bf16.mxu1 %v2234_v4  ;;  %v1512_v59 = vld [vmem:[%s3302_s5 + $0xf0] sm:$0xff] }
  0x26   :  { %2283 = vmatprep.subr.bf16.mxu0 %v2282_v1  ;;  %v2266_v62 = vpack.c.bf16 %v1513_v60, %v1512_v59 }
  0x28   :  { %2237 = vmatpush3.bf16.msra.mxu1 %v2234_v4  ;;  %v1547_v4 = vld [vmem:[%s3301_s6 + $0x108] sm:$0xff] }
  0x29   :  { %2285 = vmatpush3.bf16.msra.mxu0 %v2282_v1  ;;  %2239 = vmatprep.subr.bf16.mxu1 %v2238_v17  ;;  %v2890_v1 = vld [vmem:[%s3303_s1 + $0x18] sm:$0xff] }
  0x2a   :  { %2287 = vmatprep.subr.bf16.mxu0 %v2286_v5 }
  0x2b   :  { %1873 = vmatmul.mubr.f32.vlgmr.msra.gmra.mrb[0].mxu1 %v2791_v22 }
  0x2c   :  { %2241 = vmatpush3.bf16.msra.mxu1 %v2238_v17  ;;  %1875 = vmatprep.mubr.f32.mxu1 %v2877_v61 }
  0x2d   :  { %2289 = vmatpush3.bf16.msra.mxu0 %v2286_v5  ;;  %2243 = vmatprep.subr.bf16.mxu1 %v2242_v25  ;;  %v2900_v5 = vpack.c.bf16 %v1547_v4, %v1546_v3 }
  0x2e   :  { %2291 = vmatprep.subr.bf16.mxu0 %v2290_v8 }
  0x2f   :  { %1876 = vmatmul.mubr.f32.gmra.mrb[2].mxu1 %v2890_v1 }
  0x30   :  { %2245 = vmatpush3.bf16.msra.mxu1 %v2242_v25 }
  0x31   :  { %2293 = vmatpush3.bf16.msra.mxu0 %v2290_v8  ;;  %2247 = vmatprep.subr.bf16.mxu1 %v2246_v31 }
  0x32   :  { %2295 = vmatprep.subr.bf16.mxu0 %v2294_v11 }
  0x34   :  { %2249 = vmatpush3.bf16.msra.mxu1 %v2246_v31 }
  0x35   :  { %2297 = vmatpush3.bf16.msra.mxu0 %v2294_v11  ;;  %2251 = vmatprep.subr.bf16.mxu1 %v2250_v37 }
  0x36   :  { %2299 = vmatprep.subr.bf16.mxu0 %v2298_v14 }
  0x38   :  { %2253 = vmatpush3.bf16.msra.mxu1 %v2250_v37 }
  0x39   :  { %2301 = vmatpush3.bf16.msra.mxu0 %v2298_v14  ;;  %2255 = vmatprep.subr.bf16.mxu1 %v2254_v43 }
  0x3a   :  { %2303 = vmatprep.subr.bf16.mxu0 %v2302_v21 }
  0x3c   :  { %1949 = vmatmul.mubr.f32.vlgmr.msra.gmra.mrb[12].mxu0 %v2791_v22  ;;  %2257 = vmatpush3.bf16.msra.mxu1 %v2254_v43  ;;  %v2932_v43 = vsub.s32 0, %v2907_v9 }
  0x3d   :  { %2305 = vmatpush3.bf16.msra.mxu0 %v2302_v21  ;;  %2259 = vmatprep.subr.bf16.mxu1 %v2258_v49 }
  0x3e   :  { %2307 = vmatprep.subr.bf16.mxu0 %v2306_v28  ;;  %1951 = vmatprep.mubr.f32.mxu0 %v2877_v61  ;;  %v412_v50 = vrot.slane %v408_v45, %v2932_v43 }
  0x40   :  { %2261 = vmatpush3.bf16.msra.mxu1 %v2258_v49  ;;  %1952 = vmatmul.mubr.f32.gmra.mrb[14].mxu0 %v2890_v1 }
  0x41   :  { %2309 = vmatpush3.bf16.msra.mxu0 %v2306_v28  ;;  %2263 = vmatprep.subr.bf16.mxu1 %v2262_v55 }
  0x42   :  { %2311 = vmatprep.subr.bf16.mxu0 %v2310_v34 }
  0x44   :  { %2265 = vmatpush3.bf16.msra.mxu1 %v2262_v55 }
  0x45   :  { %2313 = vmatpush3.bf16.msra.mxu0 %v2310_v34  ;;  %2267 = vmatprep.subr.bf16.mxu1 %v2266_v62 }
  0x46   :  { %2315 = vmatprep.subr.bf16.mxu0 %v2314_v40 }
  0x48   :  { %2269 = vmatpush3.bf16.msra.mxu1 %v2266_v62 }
  0x49   :  { %2317 = vmatpush3.bf16.msra.mxu0 %v2314_v40  ;;  %2335 = vmatprep.subr.bf16.mxu1 %v2900_v5 }
  0x4a   :  { %2319 = vmatprep.subr.bf16.mxu0 %v2318_v46 }
  0x4d   :  { %2321 = vmatpush3.bf16.msra.mxu0 %v2318_v46 }
  0x4e   :  { %2323 = vmatprep.subr.bf16.mxu0 %v2322_v52 }
  0x51   :  { %2325 = vmatpush3.bf16.msra.mxu0 %v2322_v52  ;;  %v2942_v52 = vsub.s32 1, %v2907_v9 }
  0x52   :  { %2327 = vmatprep.subr.bf16.mxu0 %v2326_v58 }
  0x55   :  { %2329 = vmatpush3.bf16.msra.mxu0 %v2326_v58 }
  0x56   :  { %2331 = vmatprep.subr.bf16.mxu0 %v2330_v2 }
  0x59   :  { %2333 = vmatpush3.bf16.msra.mxu0 %v2330_v2  ;;  %v424_v2 = vrot.slane %v408_v45, %v2942_v52 }
  0x84   :  { %v2903_v7 = vpop.permute.xlu1 %382 }
  0x85   :  { %v2905_v8 = vpop.permute.xlu0 %174 }
  0x88   :  { %v2910_v14 = vpop.permute.xlu1 %387 }
  0x89   :  { %v2912_v15 = vpop.permute.xlu0 %179 }
  0x8d   :  { %v2919_v25 = vpop.permute.xlu1 %189 }
  0x8e   :  { %v2926_v30 = vpop.permute.xlu0 %184 }
  0x91   :  { %v2944_v55 = vpop.permute.xlu1 %397 }
  0x92   :  { %v2951_v58 = vpop.permute.xlu0 %392 }
  0xdf   :  { %v1808_v10 = vpop.f32.mrb[0].mxu0 }
  0xe0   :  { %v162_v11 = vrot.slane %v1808_v10, 7  ;;  %v142_v12 = vpop.f32.mrb[1].mxu0 }
  0xe1   :  { %v161_v13 = vrot.slane %v142_v12, 7  ;;  %v432_v12 = vrot.slane %v408_v45, %v2949_v57  ;;  %v1556_v45 = vld [vmem:[%s3301_s6 + $0x150] sm:$0xff] }
  0xe3   :  { %v1811_v16 = vpop.f32.mrb[2].mxu0  ;;  %v170_v17 = vsel %vm167_vm1, %v161_v13, %v162_v11 }
  0xe4   :  { %v164_v18 = vrot.slane %v1811_v16, 7  ;;  %v152_v19 = vpop.f32.mrb[3].mxu0  ;;  %v193_v23 = vmul.f32 %v2912_v15, %v170_v17 }
  0xe5   :  { %v163_v21 = vrot.slane %v152_v19, 7 }
  0xe6   :  { %v171_v24 = vsel %vm167_vm1, %v164_v18, %v161_v13 }
  0xe7   :  { %v1822_v26 = vpop.f32.mrb[4].mxu0  ;;  %v192_v27 = vmul.f32 %v2905_v8, %v171_v24  ;;  %v168_v28 = vsel %vm167_vm1, %v163_v21, %v164_v18  ;;  %v169_v29 = vsel %vm167_vm1, %v162_v11, %v163_v21 }
  0xe8   :  { %v268_v31 = vadd.f32 %v1822_v26, %v193_v23  ;;  %v262_v32 = vpop.f32.mrb[5].mxu0  ;;  %v195_v34 = vmul.f32 %v2919_v25, %v168_v28  ;;  %v194_v36 = vmul.f32 %v2926_v30, %v169_v29  ;;  %v1548_v26 = vld [vmem:[%s3301_s6 + $0x110] sm:$0xff] }
  0xe9   :  { %v263_v33 = vadd.f32 %v262_v32, %v192_v27  ;;  %v1549_v27 = vld [vmem:[%s3301_s6 + $0x118] sm:$0xff] }
  0xeb   :  { %v1825_v35 = vpop.f32.mrb[6].mxu0 }
  0xec   :  { %v278_v37 = vadd.f32 %v1825_v35, %v195_v34  ;;  %v272_v38 = vpop.f32.mrb[7].mxu0  ;;  %v1550_v35 = vld [vmem:[%s3301_s6 + $0x120] sm:$0xff] }
  0xed   :  { %v273_v39 = vadd.f32 %v272_v38, %v194_v36  ;;  %v1551_v36 = vld [vmem:[%s3301_s6 + $0x128] sm:$0xff] }
  0xee   :  { %v2342_v38 = vpack.c.bf16 %v1551_v36, %v1550_v35  ;;  %v1580_v35 = vld [vmem:[%s3305_s7 + $0x110] sm:$0xff]  ;;  %v1581_v36 = vld [vmem:[%s3305_s7 + $0x118] sm:$0xff] }
  0xef   :  { %v1836_v40 = vpop.f32.mrb[8].mxu0 }
  0xf0   :  { %v372_v41 = vrot.slane %v1836_v40, 1  ;;  %v352_v42 = vpop.f32.mrb[9].mxu0  ;;  %v1553_v40 = vld [vmem:[%s3301_s6 + $0x138] sm:$0xff] }
  0xf1   :  { %v371_v44 = vrot.slane %v352_v42, 1  ;;  %v1555_v42 = vld [vmem:[%s3301_s6 + $0x148] sm:$0xff] }
  0xf3   :  { %v378_v46 = vsel %vm375_vm2, %v371_v44, %v372_v41  ;;  %v1839_v47 = vpop.f32.mrb[10].mxu0 }
  0xf4   :  { %v400_v48 = vmul.f32 %v2903_v7, %v378_v46  ;;  %v374_v49 = vrot.slane %v1839_v47, 1  ;;  %v362_v51 = vpop.f32.mrb[11].mxu0  ;;  %v1558_v47 = vld [vmem:[%s3301_s6 + $0x160] sm:$0xff] }
  0xf5   :  { %v373_v53 = vrot.slane %v362_v51, 1  ;;  %v1561_v51 = vld [vmem:[%s3301_s6 + $0x178] sm:$0xff] }
  0xf6   :  { %v404_v54 = vadd.f32 %v400_v48, %v263_v33  ;;  %v379_v56 = vsel %vm375_vm2, %v374_v49, %v371_v44  ;;  %v2338_v33 = vpack.c.bf16 %v1549_v27, %v1548_v26  ;;  %v1559_v48 = vld [vmem:[%s3301_s6 + $0x168] sm:$0xff]  ;;  %v1578_v27 = vld [vmem:[%s3305_s7 + $0x100] sm:$0xff] }
  0xf7   :  { %v403_v59 = vmul.f32 %v2944_v55, %v379_v56  ;;  %v376_v60 = vsel %vm375_vm2, %v373_v53, %v374_v49  ;;  %v377_v62 = vsel %vm375_vm2, %v372_v41, %v373_v53  ;;  %v1554_v41 = vld [vmem:[%s3301_s6 + $0x140] sm:$0xff]  ;;  %v2358_v49 = vpack.c.bf16 %v1559_v48, %v1558_v47  ;;  %v1531_v56 = vld [vmem:[%s3302_s5 + $0x108] sm:$0xff]  ;;  %v1585_v47 = vld [vmem:[%s3305_s7 + $0x138] sm:$0xff] }
  0xf8   :  { %v401_v63 = vmul.f32 %v2910_v14, %v377_v62  ;;  %v402_v0 = vmul.f32 %v2951_v58, %v376_v60  ;;  %v413_v3 = vadd.f32 %v412_v50, %v404_v54  ;;  %v2350_v44 = vpack.c.bf16 %v1555_v42, %v1554_v41  ;;  %v1530_v54 = vld [vmem:[%s3302_s5 + $0x100] sm:$0xff]  ;;  %v1532_v60 = vld [vmem:[%s3302_s5 + $0x110] sm:$0xff]  ;;  %v1533_v62 = vld [vmem:[%s3302_s5 + $0x118] sm:$0xff] }
  0xf9   :  { %v407_v4 = vadd.f32 %v403_v59, %v278_v37  ;;  %v2366_v59 = vpack.c.bf16 %v1531_v56, %v1530_v54  ;;  %v1126_v26 = vld [vmem:[%s3305_s7 + $0x8] sm:$0xff] }
  0xfa   :  { %v405_v6 = vadd.f32 %v401_v63, %v268_v31  ;;  %v406_v10 = vadd.f32 %v402_v0, %v273_v39  ;;  %v417_v11 = vmax.f32 %v413_v3, 0.0  ;;  %v1552_v39 = vld [vmem:[%s3301_s6 + $0x130] sm:$0xff]  ;;  %v2370_v63 = vpack.c.bf16 %v1533_v62, %v1532_v60  ;;  %v1534_v0 = vld [vmem:[%s3302_s5 + $0x120] sm:$0xff]  ;;  %v1587_v54 = vld [vmem:[%s3305_s7 + $0x148] sm:$0xff] }
  0xfb   :  { %v416_v13 = vadd.f32 %v412_v50, %v407_v4  ;;  %v1536_v4 = vld [vmem:[%s3302_s5 + $0x130] sm:$0xff]  ;;  %v1136_v60 = vld [vmem:[%s3305_s7 + $0x58] sm:$0xff] }
  0xfc   :  { %v414_v16 = vadd.f32 %v412_v50, %v405_v6  ;;  %v425_v17 = vmul.f32 %v424_v2, %v417_v11  ;;  %v415_v18 = vadd.f32 %v412_v50, %v406_v10  ;;  %v1560_v50 = vld [vmem:[%s3301_s6 + $0x170] sm:$0xff]  ;;  %v1537_v6 = vld [vmem:[%s3302_s5 + $0x138] sm:$0xff]  ;;  %v1539_v10 = vld [vmem:[%s3302_s5 + $0x148] sm:$0xff] }
  0xfd   :  { %v420_v19 = vmax.f32 %v416_v13, 0.0  ;;  %v2362_v53 = vpack.c.bf16 %v1561_v51, %v1560_v50  ;;  %v1134_v50 = vld [vmem:[%s3305_s7 + $0x48] sm:$0xff] }
  0xfe   :  { %v418_v21 = vmax.f32 %v414_v16, 0.0  ;;  %v2962_v23 = vadd.f32 %v432_v12, %v425_v17  ;;  %v419_v24 = vmax.f32 %v415_v18, 0.0  ;;  %v1542_v16 = vld [vmem:[%s3302_s5 + $0x160] sm:$0xff]  ;;  %v1543_v17 = vld [vmem:[%s3302_s5 + $0x168] sm:$0xff] }
  0xff   :  { %v428_v34 = vmul.f32 %v424_v2, %v420_v19  ;;  %v2390_v18 = vpack.c.bf16 %v1543_v17, %v1542_v16  ;;  %v1544_v19 = vld [vmem:[%s3302_s5 + $0x170] sm:$0xff]  ;;  %v1593_v16 = vld [vmem:[%s3305_s7 + $0x178] sm:$0xff] }
 0x100   :  { %v426_v28 = vmul.f32 %v424_v2, %v418_v21  ;;  %1910 = vmatprep.mubr.f32.mxu1 %v2962_v23  ;;  %1986 = vmatprep.mubr.f32.mxu0 %v2962_v23  ;;  %v427_v29 = vmul.f32 %v424_v2, %v419_v24  ;;  %v1535_v2 = vld [vmem:[%s3302_s5 + $0x128] sm:$0xff]  ;;  %v1545_v21 = vld [vmem:[%s3302_s5 + $0x178] sm:$0xff]  ;;  %v1125_v24 = vld [vmem:[%s3305_s7] sm:$0xff] }
 0x101   :  { %v2987_v37 = vadd.f32 %v432_v12, %v428_v34  ;;  %v2374_v3 = vpack.c.bf16 %v1535_v2, %v1534_v0  ;;  %v1589_v0 = vld [vmem:[%s3305_s7 + $0x158] sm:$0xff] }
 0x102   :  { %v2972_v31 = vadd.f32 %v432_v12, %v426_v28  ;;  %v2974_v32 = vadd.f32 %v432_v12, %v427_v29  ;;  %v1541_v12 = vld [vmem:[%s3302_s5 + $0x158] sm:$0xff]  ;;  %v2398_v28 = vpack.c.bf16 %v1126_v26, %v1125_v24  ;;  %v1579_v29 = vld [vmem:[%s3305_s7 + $0x108] sm:$0xff] }
 0x104   :  { %1911 = vmatmul.mubr.f32.vlgmr.msra.gmra.mrb[0].mxu1 %v2972_v31  ;;  %1987 = vmatmul.mubr.f32.vlgmr.msra.gmra.mrb[12].mxu0 %v2972_v31 }
 0x105   :  { %2337 = vmatpush3.bf16.msra.mxu1 %v2900_v5  ;;  %1913 = vmatprep.mubr.f32.mxu1 %v2974_v32  ;;  %v2346_v5 = vpack.c.bf16 %v1553_v40, %v1552_v39  ;;  %v1130_v39 = vld [vmem:[%s3305_s7 + $0x28] sm:$0xff]  ;;  %v1582_v40 = vld [vmem:[%s3305_s7 + $0x120] sm:$0xff] }
 0x106   :  { %1989 = vmatprep.mubr.f32.mxu0 %v2974_v32  ;;  %2339 = vmatprep.subr.bf16.mxu1 %v2338_v33 }
 0x107   :  { %2399 = vmatprep.subr.bf16.mxu0 %v2398_v28 }
 0x108   :  { %1914 = vmatmul.mubr.f32.gmra.mrb[2].mxu1 %v2987_v37  ;;  %1990 = vmatmul.mubr.f32.gmra.mrb[14].mxu0 %v2987_v37 }
 0x109   :  { %2341 = vmatpush3.bf16.msra.mxu1 %v2338_v33  ;;  %2024 = vmatprep.mubr.f32.mxu1 %v2785_v20  ;;  %v1557_v20 = vld [vmem:[%s3301_s6 + $0x158] sm:$0xff]  ;;  %v2462_v33 = vpack.c.bf16 %v1579_v29, %v1578_v27 }
 0x10a   :  { %2343 = vmatprep.subr.bf16.mxu1 %v2342_v38  ;;  %v2354_v46 = vpack.c.bf16 %v1557_v20, %v1556_v45  ;;  %2401 = vmatpush3.bf16.msra.mxu0 %v2398_v28  ;;  %v1132_v45 = vld [vmem:[%s3305_s7 + $0x38] sm:$0xff] }
 0x10d   :  { %2345 = vmatpush3.bf16.msra.mxu1 %v2342_v38  ;;  %v2466_v38 = vpack.c.bf16 %v1581_v36, %v1580_v35 }
 0x10e   :  { %2347 = vmatprep.subr.bf16.mxu1 %v2346_v5 }
 0x111   :  { %2349 = vmatpush3.bf16.msra.mxu1 %v2346_v5  ;;  %v1583_v5 = vld [vmem:[%s3305_s7 + $0x128] sm:$0xff] }
 0x112   :  { %2351 = vmatprep.subr.bf16.mxu1 %v2350_v44  ;;  %v2470_v42 = vpack.c.bf16 %v1583_v5, %v1582_v40 }
 0x115   :  { %2353 = vmatpush3.bf16.msra.mxu1 %v2350_v44  ;;  %v1131_v44 = vld [vmem:[%s3305_s7 + $0x30] sm:$0xff] }
 0x116   :  { %2355 = vmatprep.subr.bf16.mxu1 %v2354_v46  ;;  %v2410_v20 = vpack.c.bf16 %v1132_v45, %v1131_v44 }
 0x119   :  { %2357 = vmatpush3.bf16.msra.mxu1 %v2354_v46  ;;  %v1584_v46 = vld [vmem:[%s3305_s7 + $0x130] sm:$0xff] }
 0x11a   :  { %2359 = vmatprep.subr.bf16.mxu1 %v2358_v49  ;;  %v2474_v48 = vpack.c.bf16 %v1585_v47, %v1584_v46 }
 0x11d   :  { %2361 = vmatpush3.bf16.msra.mxu1 %v2358_v49  ;;  %v1133_v49 = vld [vmem:[%s3305_s7 + $0x40] sm:$0xff] }
 0x11e   :  { %2363 = vmatprep.subr.bf16.mxu1 %v2362_v53  ;;  %v2414_v51 = vpack.c.bf16 %v1134_v50, %v1133_v49 }
 0x121   :  { %2365 = vmatpush3.bf16.msra.mxu1 %v2362_v53  ;;  %v1586_v53 = vld [vmem:[%s3305_s7 + $0x140] sm:$0xff] }
 0x122   :  { %2367 = vmatprep.subr.bf16.mxu1 %v2366_v59  ;;  %v2478_v56 = vpack.c.bf16 %v1587_v54, %v1586_v53  ;;  %v1079_v53 = vld [vmem:[%s3306_s9] sm:$0x7] }
 0x124   :  { %2025 = vmatmul.mubr.f32.vlgmr.msra.gmra.mrb[4].mxu1 %v2791_v22  ;;  %v2378_v22 = vpack.c.bf16 %v1537_v6, %v1536_v4  ;;  %v1138_v4 = vld [vmem:[%s3305_s7 + $0x68] sm:$0xff] }
 0x125   :  { %2369 = vmatpush3.bf16.msra.mxu1 %v2366_v59  ;;  %2027 = vmatprep.mubr.f32.mxu1 %v2877_v61  ;;  %v1538_v61 = vld [vmem:[%s3302_s5 + $0x140] sm:$0xff]  ;;  %v1135_v59 = vld [vmem:[%s3305_s7 + $0x50] sm:$0xff] }
 0x126   :  { %2371 = vmatprep.subr.bf16.mxu1 %v2370_v63  ;;  %v2382_v11 = vpack.c.bf16 %v1539_v10, %v1538_v61  ;;  %v2418_v62 = vpack.c.bf16 %v1136_v60, %v1135_v59  ;;  %v1591_v61 = vld [vmem:[%s3305_s7 + $0x168] sm:$0xff] }
 0x128   :  { %2028 = vmatmul.mubr.f32.gmra.mrb[6].mxu1 %v2890_v1  ;;  %v1540_v1 = vld [vmem:[%s3302_s5 + $0x150] sm:$0xff] }
 0x129   :  { %2373 = vmatpush3.bf16.msra.mxu1 %v2370_v63  ;;  %2062 = vmatprep.mubr.f32.mxu1 %v2962_v23  ;;  %v2386_v13 = vpack.c.bf16 %v1541_v12, %v1540_v1  ;;  %v2394_v23 = vpack.c.bf16 %v1545_v21, %v1544_v19  ;;  %v1588_v63 = vld [vmem:[%s3305_s7 + $0x150] sm:$0xff]  ;;  %v1140_v1 = vld [vmem:[%s3305_s7 + $0x78] sm:$0xff]  ;;  %v1563_v19 = vld [vmem:[%s3305_s7 + $0x88] sm:$0xff] }
 0x12a   :  { %2375 = vmatprep.subr.bf16.mxu1 %v2374_v3  ;;  %v2482_v2 = vpack.c.bf16 %v1589_v0, %v1588_v63  ;;  %v1083_v63 = vrot.slane %v1079_v53, %v2932_v43 }
 0x12d   :  { %2377 = vmatpush3.bf16.msra.mxu1 %v2374_v3  ;;  %v1137_v3 = vld [vmem:[%s3305_s7 + $0x60] sm:$0xff] }
 0x12e   :  { %2379 = vmatprep.subr.bf16.mxu1 %v2378_v22  ;;  %v2422_v6 = vpack.c.bf16 %v1138_v4, %v1137_v3 }
 0x131   :  { %2381 = vmatpush3.bf16.msra.mxu1 %v2378_v22  ;;  %v1590_v22 = vld [vmem:[%s3305_s7 + $0x160] sm:$0xff] }
 0x132   :  { %2383 = vmatprep.subr.bf16.mxu1 %v2382_v11  ;;  %v2486_v10 = vpack.c.bf16 %v1591_v61, %v1590_v22 }
 0x135   :  { %2385 = vmatpush3.bf16.msra.mxu1 %v2382_v11  ;;  %v1139_v11 = vld [vmem:[%s3305_s7 + $0x70] sm:$0xff] }
 0x136   :  { %2387 = vmatprep.subr.bf16.mxu1 %v2386_v13  ;;  %v2426_v12 = vpack.c.bf16 %v1140_v1, %v1139_v11  ;;  %v1095_v11 = vrot.slane %v1079_v53, %v2942_v52 }
 0x139   :  { %2389 = vmatpush3.bf16.msra.mxu1 %v2386_v13  ;;  %v1592_v13 = vld [vmem:[%s3305_s7 + $0x170] sm:$0xff] }
 0x13a   :  { %2391 = vmatprep.subr.bf16.mxu1 %v2390_v18  ;;  %v2490_v17 = vpack.c.bf16 %v1593_v16, %v1592_v13 }
 0x13d   :  { %2393 = vmatpush3.bf16.msra.mxu1 %v2390_v18  ;;  %v1562_v18 = vld [vmem:[%s3305_s7 + $0x80] sm:$0xff] }
 0x13e   :  { %2395 = vmatprep.subr.bf16.mxu1 %v2394_v23  ;;  %v3179_v21 = vpack.c.bf16 %v1563_v19, %v1562_v18  ;;  %v1103_v18 = vrot.slane %v1079_v53, %v2949_v57  ;;  %v1575_v53 = vld [vmem:[%s3305_s7 + $0xe8] sm:$0xff] }
 0x141   :  { %2397 = vmatpush3.bf16.msra.mxu1 %v2394_v23 }
 0x142   :  { %2463 = vmatprep.subr.bf16.mxu1 %v2462_v33 }
 0x144   :  { %2063 = vmatmul.mubr.f32.vlgmr.msra.gmra.mrb[4].mxu1 %v2972_v31  ;;  %v1127_v31 = vld [vmem:[%s3305_s7 + $0x10] sm:$0xff] }
 0x145   :  { %2065 = vmatprep.mubr.f32.mxu1 %v2974_v32  ;;  %v1128_v32 = vld [vmem:[%s3305_s7 + $0x18] sm:$0xff]  ;;  %2465 = vmatpush3.bf16.msra.mxu1 %v2462_v33 }
 0x146   :  { %v2402_v34 = vpack.c.bf16 %v1128_v32, %v1127_v31  ;;  %2467 = vmatprep.subr.bf16.mxu1 %v2466_v38 }
 0x148   :  { %2066 = vmatmul.mubr.f32.gmra.mrb[6].mxu1 %v2987_v37  ;;  %v1129_v37 = vld [vmem:[%s3305_s7 + $0x20] sm:$0xff]  ;;  %2403 = vmatprep.subr.bf16.mxu0 %v2402_v34 }
 0x149   :  { %v2406_v41 = vpack.c.bf16 %v1130_v39, %v1129_v37  ;;  %2405 = vmatpush3.bf16.msra.mxu0 %v2402_v34  ;;  %2469 = vmatpush3.bf16.msra.mxu1 %v2466_v38 }
 0x14a   :  { %2471 = vmatprep.subr.bf16.mxu1 %v2470_v42 }
 0x14b   :  { %2407 = vmatprep.subr.bf16.mxu0 %v2406_v41 }
 0x14d   :  { %2409 = vmatpush3.bf16.msra.mxu0 %v2406_v41  ;;  %2473 = vmatpush3.bf16.msra.mxu1 %v2470_v42 }
 0x14e   :  { %2411 = vmatprep.subr.bf16.mxu0 %v2410_v20  ;;  %2475 = vmatprep.subr.bf16.mxu1 %v2474_v48 }
 0x151   :  { %2413 = vmatpush3.bf16.msra.mxu0 %v2410_v20  ;;  %2477 = vmatpush3.bf16.msra.mxu1 %v2474_v48 }
 0x152   :  { %2415 = vmatprep.subr.bf16.mxu0 %v2414_v51  ;;  %2479 = vmatprep.subr.bf16.mxu1 %v2478_v56 }
 0x155   :  { %2417 = vmatpush3.bf16.msra.mxu0 %v2414_v51  ;;  %2481 = vmatpush3.bf16.msra.mxu1 %v2478_v56 }
 0x156   :  { %2419 = vmatprep.subr.bf16.mxu0 %v2418_v62  ;;  %2483 = vmatprep.subr.bf16.mxu1 %v2482_v2 }
 0x159   :  { %2421 = vmatpush3.bf16.msra.mxu0 %v2418_v62  ;;  %2485 = vmatpush3.bf16.msra.mxu1 %v2482_v2 }
 0x15a   :  { %2423 = vmatprep.subr.bf16.mxu0 %v2422_v6  ;;  %2487 = vmatprep.subr.bf16.mxu1 %v2486_v10 }
 0x15d   :  { %2425 = vmatpush3.bf16.msra.mxu0 %v2422_v6  ;;  %2489 = vmatpush3.bf16.msra.mxu1 %v2486_v10 }
 0x15e   :  { %2427 = vmatprep.subr.bf16.mxu0 %v2426_v12  ;;  %2491 = vmatprep.subr.bf16.mxu1 %v2490_v17 }
 0x161   :  { %2429 = vmatpush3.bf16.msra.mxu0 %v2426_v12  ;;  %2493 = vmatpush3.bf16.msra.mxu1 %v2490_v17 }
 0x162   :  { %2431 = vmatprep.subr.bf16.mxu0 %v3179_v21 }
 0x1d7   :  { %v1912_v23 = vpop.f32.mrb[0].mxu1  ;;  %v1988_v24 = vpop.f32.mrb[12].mxu0 }
 0x1d8   :  { %v844_v26 = vrot.slane %v1988_v24, 7  ;;  %v622_v27 = vpop.f32.mrb[1].mxu1  ;;  %v824_v28 = vpop.f32.mrb[13].mxu0 }
 0x1d9   :  { %v843_v29 = vrot.slane %v824_v28, 7 }
 0x1db   :  { %v849_v31 = vsel %vm167_vm1, %v843_v29, %v844_v26  ;;  %v1915_v32 = vpop.f32.mrb[2].mxu1  ;;  %v1991_v33 = vpop.f32.mrb[14].mxu0 }
 0x1dc   :  { %v852_v34 = vmul.f32 %v849_v31, %v2912_v15  ;;  %v846_v35 = vrot.slane %v1991_v33, 7  ;;  %v632_v36 = vpop.f32.mrb[3].mxu1  ;;  %v834_v37 = vpop.f32.mrb[15].mxu0  ;;  %v1565_v33 = vld [vmem:[%s3305_s7 + $0x98] sm:$0xff] }
 0x1dd   :  { %v845_v38 = vrot.slane %v834_v37, 7 }
 0x1de   :  { %v856_v39 = vadd.f32 %v1912_v23, %v852_v34  ;;  %v850_v40 = vsel %vm167_vm1, %v846_v35, %v843_v29 }
 0x1df   :  { %v851_v5 = vmul.f32 %v850_v40, %v2905_v8  ;;  %v847_v41 = vsel %vm167_vm1, %v845_v38, %v846_v35  ;;  %v848_v42 = vsel %vm167_vm1, %v844_v26, %v845_v38  ;;  %v1566_v40 = vld [vmem:[%s3305_s7 + $0xa0] sm:$0xff] }
 0x1e0   :  { %v853_v44 = vmul.f32 %v848_v42, %v2926_v30  ;;  %v854_v45 = vmul.f32 %v847_v41, %v2919_v25 }
 0x1e1   :  { %v855_v20 = vadd.f32 %v851_v5, %v622_v27  ;;  %v1567_v5 = vld [vmem:[%s3305_s7 + $0xa8] sm:$0xff] }
 0x1e2   :  { %v857_v46 = vadd.f32 %v853_v44, %v632_v36  ;;  %v858_v47 = vadd.f32 %v1915_v32, %v854_v45  ;;  %v1564_v32 = vld [vmem:[%s3305_s7 + $0x90] sm:$0xff]  ;;  %v2438_v42 = vpack.c.bf16 %v1567_v5, %v1566_v40  ;;  %v1569_v45 = vld [vmem:[%s3305_s7 + $0xb8] sm:$0xff] }
 0x1e3   :  { %v2434_v38 = vpack.c.bf16 %v1565_v33, %v1564_v32  ;;  %v1568_v44 = vld [vmem:[%s3305_s7 + $0xb0] sm:$0xff] }
 0x217   :  { %v2064_v48 = vpop.f32.mrb[4].mxu1 }
 0x218   :  { %v1064_v49 = vrot.slane %v2064_v48, 1  ;;  %v1044_v50 = vpop.f32.mrb[5].mxu1  ;;  %v1572_v48 = vld [vmem:[%s3305_s7 + $0xd0] sm:$0xff] }
 0x219   :  { %v1063_v51 = vrot.slane %v1044_v50, 1 }
 0x21b   :  { %v1069_v54 = vsel %vm375_vm2, %v1063_v51, %v1064_v49  ;;  %v2067_v56 = vpop.f32.mrb[6].mxu1 }
 0x21c   :  { %v1071_v59 = vmul.f32 %v1069_v54, %v2903_v7  ;;  %v1066_v60 = vrot.slane %v2067_v56, 1  ;;  %v1054_v62 = vpop.f32.mrb[7].mxu1  ;;  %v1576_v56 = vld [vmem:[%s3305_s7 + $0xf0] sm:$0xff] }
 0x21d   :  { %v1065_v0 = vrot.slane %v1054_v62, 1 }
 0x21e   :  { %v1075_v2 = vadd.f32 %v1071_v59, %v855_v20  ;;  %v1070_v3 = vsel %vm375_vm2, %v1066_v60, %v1063_v51  ;;  %v2442_v20 = vpack.c.bf16 %v1569_v45, %v1568_v44  ;;  %v1574_v51 = vld [vmem:[%s3305_s7 + $0xe0] sm:$0xff]  ;;  %v1577_v59 = vld [vmem:[%s3305_s7 + $0xf8] sm:$0xff] }
 0x21f   :  { %v1074_v4 = vmul.f32 %v1070_v3, %v2944_v55  ;;  %v1067_v6 = vsel %vm375_vm2, %v1065_v0, %v1066_v60  ;;  %v1068_v22 = vsel %vm375_vm2, %v1064_v49, %v1065_v0  ;;  %v1573_v49 = vld [vmem:[%s3305_s7 + $0xd8] sm:$0xff]  ;;  %v2454_v54 = vpack.c.bf16 %v1575_v53, %v1574_v51 }
 0x220   :  { %v1072_v61 = vmul.f32 %v1068_v22, %v2910_v14  ;;  %v1073_v10 = vmul.f32 %v1067_v6, %v2951_v58  ;;  %v1084_v1 = vadd.f32 %v1083_v63, %v1075_v2  ;;  %v2450_v50 = vpack.c.bf16 %v1573_v49, %v1572_v48 }
 0x221   :  { %v1078_v12 = vadd.f32 %v1074_v4, %v858_v47  ;;  %v2458_v60 = vpack.c.bf16 %v1577_v59, %v1576_v56 }
 0x222   :  { %v1076_v13 = vadd.f32 %v1072_v61, %v856_v39  ;;  %v1077_v16 = vadd.f32 %v1073_v10, %v857_v46  ;;  %v1088_v17 = vmax.f32 %v1084_v1, 0.0  ;;  %v1571_v46 = vld [vmem:[%s3305_s7 + $0xc8] sm:$0xff] }
 0x223   :  { %v1087_v19 = vadd.f32 %v1083_v63, %v1078_v12 }
 0x224   :  { %v1085_v23 = vadd.f32 %v1083_v63, %v1076_v13  ;;  %v1096_v24 = vmul.f32 %v1095_v11, %v1088_v17  ;;  %v1086_v26 = vadd.f32 %v1083_v63, %v1077_v16 }
 0x225   :  { %v1091_v31 = vmax.f32 %v1087_v19, 0.0 }
 0x226   :  { %v1089_v27 = vmax.f32 %v1085_v23, 0.0  ;;  %v1104_v28 = vadd.f32 %v1103_v18, %v1096_v24  ;;  %v1090_v29 = vmax.f32 %v1086_v26, 0.0 }
 0x227   :  { %v1099_v39 = vmul.f32 %v1095_v11, %v1091_v31  ;;  %v1441_v31 = vld [vmem:[%s3307_s10] sm:$0x7] }
 0x228   :  { %v1097_v34 = vmul.f32 %v1095_v11, %v1089_v27  ;;  %2100 = vmatprep.mubr.f32.mxu0 %v1104_v28  ;;  %2176 = vmatprep.mubr.f32.mxu1 %v1104_v28  ;;  %v1098_v35 = vmul.f32 %v1095_v11, %v1090_v29  ;;  %v1457_v45 = vrot.slane %v1441_v31, %v2942_v52 }
 0x229   :  { %v1107_v41 = vadd.f32 %v1103_v18, %v1099_v39 }
 0x22a   :  { %v1105_v36 = vadd.f32 %v1103_v18, %v1097_v34  ;;  %v1106_v37 = vadd.f32 %v1103_v18, %v1098_v35 }
 0x22c   :  { %2101 = vmatmul.mubr.f32.vlgmr.msra.gmra.mrb[16].mxu0 %v1105_v36  ;;  %2177 = vmatmul.mubr.f32.vlgmr.msra.gmra.mrb[8].mxu1 %v1105_v36 }
 0x22d   :  { %2433 = vmatpush3.bf16.msra.mxu0 %v3179_v21  ;;  %2103 = vmatprep.mubr.f32.mxu0 %v1106_v37  ;;  %v1570_v21 = vld [vmem:[%s3305_s7 + $0xc0] sm:$0xff] }
 0x22e   :  { %2179 = vmatprep.mubr.f32.mxu1 %v1106_v37  ;;  %2435 = vmatprep.subr.bf16.mxu0 %v2434_v38  ;;  %v2446_v47 = vpack.c.bf16 %v1571_v46, %v1570_v21 }
 0x230   :  { %2104 = vmatmul.mubr.f32.gmra.mrb[18].mxu0 %v1107_v41  ;;  %2180 = vmatmul.mubr.f32.gmra.mrb[10].mxu1 %v1107_v41 }
 0x231   :  { %2437 = vmatpush3.bf16.msra.mxu0 %v2434_v38  ;;  %2138 = vmatprep.mubr.f32.mxu0 %v1104_v28 }
 0x232   :  { %2439 = vmatprep.subr.bf16.mxu0 %v2438_v42 }
 0x235   :  { %2441 = vmatpush3.bf16.msra.mxu0 %v2438_v42 }
 0x236   :  { %2443 = vmatprep.subr.bf16.mxu0 %v2442_v20 }
 0x239   :  { %2445 = vmatpush3.bf16.msra.mxu0 %v2442_v20 }
 0x23a   :  { %2447 = vmatprep.subr.bf16.mxu0 %v2446_v47 }
 0x23d   :  { %2449 = vmatpush3.bf16.msra.mxu0 %v2446_v47 }
 0x23e   :  { %2451 = vmatprep.subr.bf16.mxu0 %v2450_v50 }
 0x241   :  { %2453 = vmatpush3.bf16.msra.mxu0 %v2450_v50 }
 0x242   :  { %2455 = vmatprep.subr.bf16.mxu0 %v2454_v54 }
 0x245   :  { %2457 = vmatpush3.bf16.msra.mxu0 %v2454_v54 }
 0x246   :  { %2459 = vmatprep.subr.bf16.mxu0 %v2458_v60 }
 0x249   :  { %2461 = vmatpush3.bf16.msra.mxu0 %v2458_v60 }
 0x24c   :  { %2139 = vmatmul.mubr.f32.vlgmr.msra.gmra.mrb[20].mxu0 %v1105_v36 }
 0x24d   :  { %2141 = vmatprep.mubr.f32.mxu0 %v1106_v37  ;;  %v1445_v37 = vrot.slane %v1441_v31, %v2932_v43 }
 0x250   :  { %2142 = vmatmul.mubr.f32.gmra.mrb[22].mxu0 %v1107_v41 }
 0x2ff   :  { %v2102_v62 = vpop.f32.mrb[16].mxu0  ;;  %v2178_v63 = vpop.f32.mrb[8].mxu1 }
 0x300   :  { %v1227_v0 = vrot.slane %v2102_v62, 7  ;;  %v1426_v2 = vrot.slane %v2178_v63, 1  ;;  %v1207_v3 = vpop.f32.mrb[17].mxu0  ;;  %v1406_v4 = vpop.f32.mrb[9].mxu1 }
 0x301   :  { %v1226_v6 = vrot.slane %v1207_v3, 7  ;;  %v1425_v22 = vrot.slane %v1406_v4, 1 }
 0x303   :  { %v1431_v61 = vsel %vm375_vm2, %v1425_v22, %v1426_v2  ;;  %v2105_v10 = vpop.f32.mrb[18].mxu0  ;;  %v2181_v11 = vpop.f32.mrb[10].mxu1  ;;  %v1232_v1 = vsel %vm167_vm1, %v1226_v6, %v1227_v0 }
 0x304   :  { %v1229_v12 = vrot.slane %v2105_v10, 7  ;;  %v1428_v13 = vrot.slane %v2181_v11, 1  ;;  %v1217_v16 = vpop.f32.mrb[19].mxu0  ;;  %v1416_v17 = vpop.f32.mrb[11].mxu1  ;;  %v1235_v32 = vmul.f32 %v1232_v1, %v2912_v15  ;;  %v1433_v40 = vmul.f32 %v1431_v61, %v2903_v7 }
 0x305   :  { %v1228_v18 = vrot.slane %v1217_v16, 7  ;;  %v1427_v19 = vrot.slane %v1416_v17, 1  ;;  %v1465_v7 = vrot.slane %v1441_v31, %v2949_v57 }
 0x306   :  { %v1432_v23 = vsel %vm375_vm2, %v1428_v13, %v1425_v22  ;;  %v1233_v24 = vsel %vm167_vm1, %v1229_v12, %v1226_v6 }
 0x307   :  { %v1429_v26 = vsel %vm375_vm2, %v1427_v19, %v1428_v13  ;;  %v1430_v27 = vsel %vm375_vm2, %v1426_v2, %v1427_v19  ;;  %v1230_v28 = vsel %vm167_vm1, %v1228_v18, %v1229_v12  ;;  %v1231_v29 = vsel %vm167_vm1, %v1227_v0, %v1228_v18 }
 0x308   :  { %v1234_v34 = vmul.f32 %v1233_v24, %v2905_v8  ;;  %v1434_v36 = vmul.f32 %v1430_v27, %v2910_v14  ;;  %v1237_v5 = vmul.f32 %v1230_v28, %v2919_v25  ;;  %v1236_v44 = vmul.f32 %v1231_v29, %v2926_v30 }
 0x309   :  { %v1436_v20 = vmul.f32 %v1432_v23, %v2944_v55  ;;  %v1435_v46 = vmul.f32 %v1429_v26, %v2951_v58 }
 0x31f   :  { %v2140_v33 = vpop.f32.mrb[20].mxu0 }
 0x320   :  { %v1310_v35 = vadd.f32 %v2140_v33, %v1235_v32  ;;  %v1304_v38 = vpop.f32.mrb[21].mxu0 }
 0x321   :  { %v1305_v39 = vadd.f32 %v1304_v38, %v1234_v34 }
 0x322   :  { %v1438_v9 = vadd.f32 %v1434_v36, %v1310_v35 }
 0x323   :  { %v1437_v41 = vadd.f32 %v1433_v40, %v1305_v39  ;;  %v2143_v42 = vpop.f32.mrb[22].mxu0 }
 0x324   :  { %v1447_v15 = vadd.f32 %v1445_v37, %v1438_v9  ;;  %v1320_v8 = vadd.f32 %v2143_v42, %v1237_v5  ;;  %v1314_v14 = vpop.f32.mrb[23].mxu0 }
 0x325   :  { %v1446_v21 = vadd.f32 %v1445_v37, %v1437_v41  ;;  %v1315_v43 = vadd.f32 %v1314_v14, %v1236_v44 }
 0x326   :  { %v1451_v47 = vmax.f32 %v1447_v15, 0.0  ;;  %v1440_v48 = vadd.f32 %v1436_v20, %v1320_v8 }
 0x327   :  { %v1450_v25 = vmax.f32 %v1446_v21, 0.0  ;;  %v1439_v49 = vadd.f32 %v1435_v46, %v1315_v43 }
 0x328   :  { %v1459_v50 = vmul.f32 %v1457_v45, %v1451_v47  ;;  %v1449_v51 = vadd.f32 %v1445_v37, %v1440_v48 }
 0x329   :  { %v1458_v30 = vmul.f32 %v1457_v45, %v1450_v25  ;;  %v1448_v53 = vadd.f32 %v1445_v37, %v1439_v49 }
 0x32a   :  { %v1467_v54 = vadd.f32 %v1465_v7, %v1459_v50  ;;  %v1453_v52 = vmax.f32 %v1449_v51, 0.0 }
 0x32b   :  { %v1466_v56 = vadd.f32 %v1465_v7, %v1458_v30  ;;  %v1452_v59 = vmax.f32 %v1448_v53, 0.0 }
 0x32c   :  { %1471 = vst [vmem:[%s3308_s11 + $0x8] sm:$0xff] %v1467_v54  ;;  %v1461_v55 = vmul.f32 %v1457_v45, %v1453_v52 }
 0x32d   :  { %1470 = vst [vmem:[%s3308_s11] sm:$0xff] %v1466_v56  ;;  %v1460_v57 = vmul.f32 %v1457_v45, %v1452_v59 }
 0x32e   :  { %v1469_v58 = vadd.f32 %v1465_v7, %v1461_v55 }
 0x32f   :  { %v1468_v60 = vadd.f32 %v1465_v7, %v1460_v57 }
 0x330   :  { %1473 = vst [vmem:[%s3308_s11 + $0x18] sm:$0xff] %v1469_v58 }
 0x331   :  { %1472 = vst [vmem:[%s3308_s11 + $0x10] sm:$0xff] %v1468_v60 }

</bundles_post_ra>
